<compile_context>
chip_gen: v5e
topology: v5e:2x2
jax: 0.10.0
libtpu: 0.0.40
codegen_flags: <defaults>
</compile_context>

<pallas_src>
import math

import jax
import jax.numpy as jnp
from jax import lax
from jax.experimental import pallas as pl
from jax.experimental.pallas import tpu as pltpu
import numpy as np


_UNROLL_AGENT_MAX = 32      # fully unroll the agent loop up to this many agents
_UNROLL_TOTAL_MAX = 64      # fully unroll the round loop too when total steps <= this


def _rr_kernel(v_ref, pi_ref):
    # v_ref, pi_ref: (n, m, bt) VMEM tiles (items on sublanes, batch on lanes).
    n, m, bt = v_ref.shape
    num_rounds = -(-m // n)                                   # ceil(m / n), static
    total_steps = num_rounds * n
    item_ids = lax.broadcasted_iota(jnp.int32, (m, bt), 0)    # item index per sublane row
    neg_inf = jnp.float32(-jnp.inf)
    no_item = jnp.int32(m)

    def pick(i, avail):
        """One agent step for all bt batch elements. avail: 1.0 = free, 0.0 = taken."""
        row = v_ref[i]                                        # (m, bt) row fetch
        free = avail != 0.0
        masked = jnp.where(free, row, neg_inf)
        maxv = jnp.max(masked, axis=0, keepdims=True)         # sublane (item) reduce
        # Smallest free index attaining the max; if nothing is free every lane
        # maps to `no_item` (= m) so the resulting one-hot is all zeros.
        cand = jnp.where(free & (masked >= maxv), item_ids, no_item)
        idx = jnp.min(cand, axis=0, keepdims=True)            # (1, bt)
        onehot = (item_ids == idx).astype(jnp.float32)        # (m, bt)
        return onehot, avail - onehot

    avail = jnp.ones((m, bt), jnp.float32)                    # carried in vregs, no VMEM scratch

    if n <= _UNROLL_AGENT_MAX:
        # Round 0 peeled: direct stores into pi_ref -> no full-block zero-init
        # and only one vector store per step on the first round.
        for i in range(n):
            onehot, avail = pick(i, avail)
            pi_ref[i] = onehot

        rem_rounds = num_rounds - 1
        if rem_rounds > 0:
            if total_steps <= _UNROLL_TOTAL_MAX:
                # Fully unrolled: scheduler sees across round boundaries.
                for _ in range(rem_rounds):
                    for i in range(n):
                        onehot, avail = pick(i, avail)
                        pi_ref[i] = pi_ref[i] + onehot
            else:
                def round_body(_, avail):
                    for i in range(n):
                        onehot, avail = pick(i, avail)
                        pi_ref[i] = pi_ref[i] + onehot
                    return avail
                lax.fori_loop(0, rem_rounds, round_body, avail)
    else:
        # Many agents: bound code size with dynamic row indexing.
        pi_ref[...] = jnp.zeros_like(pi_ref)

        def agent_body(i, avail):
            onehot, avail = pick(i, avail)
            pi_ref[i] = pi_ref[i] + onehot
            return avail

        def round_body(_, avail):
            return lax.fori_loop(0, n, agent_body, avail)

        lax.fori_loop(0, num_rounds, round_body, avail)


def round_robin_batched(x, block_b=256):
    """x: (B, n, m) float32 -> pi: (B, n, m) float32."""
    x = jnp.asarray(x, jnp.float32)
    B, n, m = x.shape

    # Batch tile: whole batch if it fits one block, otherwise a multiple of 128
    # lanes (bounded by a v7x-safe VMEM budget).  Multiple blocks let the
    # ("parallel",) grid axis split across the two v7x TensorCores.
    block_b = max(128, (block_b // 128) * 128)
    if B <= block_b:
        bt = B
    else:
        bt = block_b
        budget = 40 << 20                                    # headroom under v7x's 64 MiB VMEM
        while bt > 128 and 16 * n * m * bt > budget:         # 2 dbl-buf * (in+out) * 4 B
            bt -= 128
    num_blocks = -(-B // bt)
    Bp = num_blocks * bt
    if Bp != B:
        x = jnp.pad(x, ((0, Bp - B), (0, 0), (0, 0)))

    # Batch on lanes / items on sublanes.
    # TODO(synk): callers able to consume the (n, m, B) layout directly should
    # skip these two full-array HBM transpose passes.
    xt = jnp.transpose(x, (1, 2, 0))                         # (n, m, Bp)

    vmem_need = 16 * n * m * bt + (2 << 20)                  # blocks + compiler scratch margin
    vmem_limit = int(min(max(vmem_need, 16 << 20), 64 << 20))

    out_t = pl.pallas_call(
        _rr_kernel,
        out_shape=jax.ShapeDtypeStruct((n, m, Bp), jnp.float32),
        grid_spec=pltpu.PrefetchScalarGridSpec(
            num_scalar_prefetch=0,
            grid=(num_blocks,),
            in_specs=[pl.BlockSpec((n, m, bt), lambda b: (0, 0, b))],
            out_specs=pl.BlockSpec((n, m, bt), lambda b: (0, 0, b)),
        ),
        compiler_params=pltpu.CompilerParams(
            dimension_semantics=("parallel",),
            vmem_limit_bytes=vmem_limit),
    )(xt)

    out = jnp.transpose(out_t, (2, 0, 1))                    # back to (Bp, n, m)
    return out[:B]


def rr_forward(x):
    """Mirrors RR.forward: accepts 2D (n, m) or 3D (B, n, m)."""
    x = jnp.asarray(x, jnp.float32)
    if x.ndim == 2:
        return round_robin_batched(x[None])[0]
    elif x.ndim == 3:
        return round_robin_batched(x)
    raise ValueError("X must be 2D or 3D")


def rr_predict(x):
    return rr_forward(x).astype(jnp.int32)


# ---------- pure-numpy reference (mirror of the PyTorch code) ----------
def _ref_round_robin(V):
    n, m = V.shape
    num_rounds = math.ceil(m / n)
    pi = np.zeros((n, m), dtype=np.float32)
    rest = np.zeros(m, dtype=bool)
    for _ in range(num_rounds):
        for i in range(n):
            free_idx = np.nonzero(~rest)[0]
            mask = np.zeros(m, dtype=np.float32)
            if len(free_idx) > 0:
                max_index = free_idx[np.argmax(V[i][free_idx])]
                mask[max_index] = 1.0
            pi[i] += mask
            rest = rest | mask.astype(bool)
    return pi


def _check(X):
    out = jax.block_until_ready(rr_forward(X))
    ref = np.stack([_ref_round_robin(np.asarray(X[b])) for b in range(X.shape[0])])
    np.testing.assert_allclose(np.asarray(out), ref, atol=0, rtol=0)


if __name__ == "__main__":
    key = jax.random.PRNGKey(0)
    k1, k2, k3, k4, k5, k6 = jax.random.split(key, 6)

    # small canonical case: B=2, n=4 agents, m=10 items (3 rounds, fully unrolled)
    X1 = jax.random.normal(k1, (2, 4, 10), dtype=jnp.float32)
    _check(X1)

    # single-block small batch, odd shapes
    X2 = jax.random.normal(k2, (10, 3, 7), dtype=jnp.float32)
    _check(X2)

    # more agents than items: some agents get nothing (zero one-hot path)
    X3 = jax.random.normal(k3, (3, 5, 3), dtype=jnp.float32)
    _check(X3)

    # multi-block + batch padding path: B=260 -> bt=256, grid=(2,), padded to 512
    X4 = jax.random.normal(k4, (260, 3, 6), dtype=jnp.float32)
    _check(X4)

    # many rounds: total steps > 64 -> fori_loop-over-rounds path
    X5 = jax.random.normal(k5, (2, 2, 80), dtype=jnp.float32)
    _check(X5)

    # many agents: n > 32 -> dynamic-index nested fori_loop path
    X6 = jax.random.normal(k6, (2, 33, 8), dtype=jnp.float32)
    _check(X6)

    # 2D path and predict()
    out2d = jax.block_until_ready(rr_predict(X1[0]))
    np.testing.assert_array_equal(
        np.asarray(out2d), _ref_round_robin(np.asarray(X1[0])).astype(np.int32))

    print("KERNEL_OK")
</pallas_src>

<mosaic_0001>
module attributes {stable_mosaic.version = 11 : i64} {
  func.func @_rr_kernel(%arg0: i32, %arg1: memref<4x10x2xf32, #tpu.memory_space<vmem>>, %arg2: memref<4x10x2xf32, #tpu.memory_space<vmem>>) attributes {dimension_semantics = [#tpu.dimension_semantics<parallel>], iteration_bounds = array<i64: 1>, scalar_prefetch = 0 : i64, scratch_operands = 0 : i64, tpu.core_type = #tpu.core_type<tc>, window_params = [{transform_indices = @transform_0, window_bounds = array<i64: 4, 10, 2>}, {transform_indices = @transform_1, window_bounds = array<i64: 4, 10, 2>}]} {
    %0 = tpu.iota {dimensions = array<i32: 0>} : vector<10x2xi32>
    %cst = arith.constant 1.000000e+00 : f32
    %1 = vector.broadcast %cst : f32 to vector<10x2xf32>
    %c0 = arith.constant 0 : index
    %c0_0 = arith.constant 0 : index
    %c0_1 = arith.constant 0 : index
    %2 = vector.load %arg1[%c0, %c0_0, %c0_1] : memref<4x10x2xf32, #tpu.memory_space<vmem>>, vector<1x10x2xf32>
    %3 = vector.shape_cast %2 : vector<1x10x2xf32> to vector<10x2xf32>
    %cst_2 = arith.constant 0.000000e+00 : f32
    %4 = vector.broadcast %cst_2 : f32 to vector<10x2xf32>
    %5 = arith.cmpf one, %1, %4 : vector<10x2xf32>
    %cst_3 = arith.constant 0xFF800000 : f32
    %6 = vector.broadcast %cst_3 : f32 to vector<10x2xf32>
    %7 = arith.select %5, %3, %6 : vector<10x2xi1>, vector<10x2xf32>
    %cst_4 = arith.constant dense<0xFF800000> : vector<2xf32>
    %8 = vector.multi_reduction <maximumf>, %7, %cst_4 [0] : vector<10x2xf32> to vector<2xf32>
    %9 = vector.shape_cast %8 : vector<2xf32> to vector<1x2xf32>
    %10 = vector.broadcast %9 : vector<1x2xf32> to vector<10x2xf32>
    %11 = arith.cmpf oge, %7, %10 : vector<10x2xf32>
    %12 = arith.andi %5, %11 : vector<10x2xi1>
    %c10_i32 = arith.constant 10 : i32
    %13 = vector.broadcast %c10_i32 : i32 to vector<10x2xi32>
    %14 = arith.select %12, %0, %13 : vector<10x2xi1>, vector<10x2xi32>
    %cst_5 = arith.constant dense<2147483647> : vector<2xi32>
    %15 = vector.multi_reduction <minsi>, %14, %cst_5 [0] : vector<10x2xi32> to vector<2xi32>
    %16 = vector.shape_cast %15 : vector<2xi32> to vector<1x2xi32>
    %17 = vector.broadcast %16 : vector<1x2xi32> to vector<10x2xi32>
    %18 = arith.cmpi eq, %0, %17 : vector<10x2xi32>
    %19 = arith.extui %18 : vector<10x2xi1> to vector<10x2xi32>
    %20 = arith.sitofp %19 : vector<10x2xi32> to vector<10x2xf32>
    %21 = arith.subf %1, %20 : vector<10x2xf32>
    %c0_6 = arith.constant 0 : index
    %c0_7 = arith.constant 0 : index
    %c0_8 = arith.constant 0 : index
    %22 = vector.load %arg2[%c0_6, %c0_7, %c0_8] : memref<4x10x2xf32, #tpu.memory_space<vmem>>, vector<1x10x2xf32>
    %23 = vector.shape_cast %22 : vector<1x10x2xf32> to vector<10x2xf32>
    %24 = vector.shape_cast %20 : vector<10x2xf32> to vector<1x10x2xf32>
    tpu.vector_store %arg2[%c0_6, %c0_7, %c0_8], %24 {strides = array<i32>} : memref<4x10x2xf32, #tpu.memory_space<vmem>>, vector<1x10x2xf32>,
    %c1 = arith.constant 1 : index
    %c0_9 = arith.constant 0 : index
    %c0_10 = arith.constant 0 : index
    %25 = vector.load %arg1[%c1, %c0_9, %c0_10] : memref<4x10x2xf32, #tpu.memory_space<vmem>>, vector<1x10x2xf32>
    %26 = vector.shape_cast %25 : vector<1x10x2xf32> to vector<10x2xf32>
    %cst_11 = arith.constant 0.000000e+00 : f32
    %27 = vector.broadcast %cst_11 : f32 to vector<10x2xf32>
    %28 = arith.cmpf one, %21, %27 : vector<10x2xf32>
    %cst_12 = arith.constant 0xFF800000 : f32
    %29 = vector.broadcast %cst_12 : f32 to vector<10x2xf32>
    %30 = arith.select %28, %26, %29 : vector<10x2xi1>, vector<10x2xf32>
    %cst_13 = arith.constant dense<0xFF800000> : vector<2xf32>
    %31 = vector.multi_reduction <maximumf>, %30, %cst_13 [0] : vector<10x2xf32> to vector<2xf32>
    %32 = vector.shape_cast %31 : vector<2xf32> to vector<1x2xf32>
    %33 = vector.broadcast %32 : vector<1x2xf32> to vector<10x2xf32>
    %34 = arith.cmpf oge, %30, %33 : vector<10x2xf32>
    %35 = arith.andi %28, %34 : vector<10x2xi1>
    %c10_i32_14 = arith.constant 10 : i32
    %36 = vector.broadcast %c10_i32_14 : i32 to vector<10x2xi32>
    %37 = arith.select %35, %0, %36 : vector<10x2xi1>, vector<10x2xi32>
    %cst_15 = arith.constant dense<2147483647> : vector<2xi32>
    %38 = vector.multi_reduction <minsi>, %37, %cst_15 [0] : vector<10x2xi32> to vector<2xi32>
    %39 = vector.shape_cast %38 : vector<2xi32> to vector<1x2xi32>
    %40 = vector.broadcast %39 : vector<1x2xi32> to vector<10x2xi32>
    %41 = arith.cmpi eq, %0, %40 : vector<10x2xi32>
    %42 = arith.extui %41 : vector<10x2xi1> to vector<10x2xi32>
    %43 = arith.sitofp %42 : vector<10x2xi32> to vector<10x2xf32>
    %44 = arith.subf %21, %43 : vector<10x2xf32>
    %c1_16 = arith.constant 1 : index
    %c0_17 = arith.constant 0 : index
    %c0_18 = arith.constant 0 : index
    %45 = vector.load %arg2[%c1_16, %c0_17, %c0_18] : memref<4x10x2xf32, #tpu.memory_space<vmem>>, vector<1x10x2xf32>
    %46 = vector.shape_cast %45 : vector<1x10x2xf32> to vector<10x2xf32>
    %47 = vector.shape_cast %43 : vector<10x2xf32> to vector<1x10x2xf32>
    tpu.vector_store %arg2[%c1_16, %c0_17, %c0_18], %47 {strides = array<i32>} : memref<4x10x2xf32, #tpu.memory_space<vmem>>, vector<1x10x2xf32>,
    %c2 = arith.constant 2 : index
    %c0_19 = arith.constant 0 : index
    %c0_20 = arith.constant 0 : index
    %48 = vector.load %arg1[%c2, %c0_19, %c0_20] : memref<4x10x2xf32, #tpu.memory_space<vmem>>, vector<1x10x2xf32>
    %49 = vector.shape_cast %48 : vector<1x10x2xf32> to vector<10x2xf32>
    %cst_21 = arith.constant 0.000000e+00 : f32
    %50 = vector.broadcast %cst_21 : f32 to vector<10x2xf32>
    %51 = arith.cmpf one, %44, %50 : vector<10x2xf32>
    %cst_22 = arith.constant 0xFF800000 : f32
    %52 = vector.broadcast %cst_22 : f32 to vector<10x2xf32>
    %53 = arith.select %51, %49, %52 : vector<10x2xi1>, vector<10x2xf32>
    %cst_23 = arith.constant dense<0xFF800000> : vector<2xf32>
    %54 = vector.multi_reduction <maximumf>, %53, %cst_23 [0] : vector<10x2xf32> to vector<2xf32>
    %55 = vector.shape_cast %54 : vector<2xf32> to vector<1x2xf32>
    %56 = vector.broadcast %55 : vector<1x2xf32> to vector<10x2xf32>
    %57 = arith.cmpf oge, %53, %56 : vector<10x2xf32>
    %58 = arith.andi %51, %57 : vector<10x2xi1>
    %c10_i32_24 = arith.constant 10 : i32
    %59 = vector.broadcast %c10_i32_24 : i32 to vector<10x2xi32>
    %60 = arith.select %58, %0, %59 : vector<10x2xi1>, vector<10x2xi32>
    %cst_25 = arith.constant dense<2147483647> : vector<2xi32>
    %61 = vector.multi_reduction <minsi>, %60, %cst_25 [0] : vector<10x2xi32> to vector<2xi32>
    %62 = vector.shape_cast %61 : vector<2xi32> to vector<1x2xi32>
    %63 = vector.broadcast %62 : vector<1x2xi32> to vector<10x2xi32>
    %64 = arith.cmpi eq, %0, %63 : vector<10x2xi32>
    %65 = arith.extui %64 : vector<10x2xi1> to vector<10x2xi32>
    %66 = arith.sitofp %65 : vector<10x2xi32> to vector<10x2xf32>
    %67 = arith.subf %44, %66 : vector<10x2xf32>
    %c2_26 = arith.constant 2 : index
    %c0_27 = arith.constant 0 : index
    %c0_28 = arith.constant 0 : index
    %68 = vector.load %arg2[%c2_26, %c0_27, %c0_28] : memref<4x10x2xf32, #tpu.memory_space<vmem>>, vector<1x10x2xf32>
    %69 = vector.shape_cast %68 : vector<1x10x2xf32> to vector<10x2xf32>
    %70 = vector.shape_cast %66 : vector<10x2xf32> to vector<1x10x2xf32>
    tpu.vector_store %arg2[%c2_26, %c0_27, %c0_28], %70 {strides = array<i32>} : memref<4x10x2xf32, #tpu.memory_space<vmem>>, vector<1x10x2xf32>,
    %c3 = arith.constant 3 : index
    %c0_29 = arith.constant 0 : index
    %c0_30 = arith.constant 0 : index
    %71 = vector.load %arg1[%c3, %c0_29, %c0_30] : memref<4x10x2xf32, #tpu.memory_space<vmem>>, vector<1x10x2xf32>
    %72 = vector.shape_cast %71 : vector<1x10x2xf32> to vector<10x2xf32>
    %cst_31 = arith.constant 0.000000e+00 : f32
    %73 = vector.broadcast %cst_31 : f32 to vector<10x2xf32>
    %74 = arith.cmpf one, %67, %73 : vector<10x2xf32>
    %cst_32 = arith.constant 0xFF800000 : f32
    %75 = vector.broadcast %cst_32 : f32 to vector<10x2xf32>
    %76 = arith.select %74, %72, %75 : vector<10x2xi1>, vector<10x2xf32>
    %cst_33 = arith.constant dense<0xFF800000> : vector<2xf32>
    %77 = vector.multi_reduction <maximumf>, %76, %cst_33 [0] : vector<10x2xf32> to vector<2xf32>
    %78 = vector.shape_cast %77 : vector<2xf32> to vector<1x2xf32>
    %79 = vector.broadcast %78 : vector<1x2xf32> to vector<10x2xf32>
    %80 = arith.cmpf oge, %76, %79 : vector<10x2xf32>
    %81 = arith.andi %74, %80 : vector<10x2xi1>
    %c10_i32_34 = arith.constant 10 : i32
    %82 = vector.broadcast %c10_i32_34 : i32 to vector<10x2xi32>
    %83 = arith.select %81, %0, %82 : vector<10x2xi1>, vector<10x2xi32>
    %cst_35 = arith.constant dense<2147483647> : vector<2xi32>
    %84 = vector.multi_reduction <minsi>, %83, %cst_35 [0] : vector<10x2xi32> to vector<2xi32>
    %85 = vector.shape_cast %84 : vector<2xi32> to vector<1x2xi32>
    %86 = vector.broadcast %85 : vector<1x2xi32> to vector<10x2xi32>
    %87 = arith.cmpi eq, %0, %86 : vector<10x2xi32>
    %88 = arith.extui %87 : vector<10x2xi1> to vector<10x2xi32>
    %89 = arith.sitofp %88 : vector<10x2xi32> to vector<10x2xf32>
    %90 = arith.subf %67, %89 : vector<10x2xf32>
    %c3_36 = arith.constant 3 : index
    %c0_37 = arith.constant 0 : index
    %c0_38 = arith.constant 0 : index
    %91 = vector.load %arg2[%c3_36, %c0_37, %c0_38] : memref<4x10x2xf32, #tpu.memory_space<vmem>>, vector<1x10x2xf32>
    %92 = vector.shape_cast %91 : vector<1x10x2xf32> to vector<10x2xf32>
    %93 = vector.shape_cast %89 : vector<10x2xf32> to vector<1x10x2xf32>
    tpu.vector_store %arg2[%c3_36, %c0_37, %c0_38], %93 {strides = array<i32>} : memref<4x10x2xf32, #tpu.memory_space<vmem>>, vector<1x10x2xf32>,
    %c0_39 = arith.constant 0 : index
    %c0_40 = arith.constant 0 : index
    %c0_41 = arith.constant 0 : index
    %94 = vector.load %arg1[%c0_39, %c0_40, %c0_41] : memref<4x10x2xf32, #tpu.memory_space<vmem>>, vector<1x10x2xf32>
    %95 = vector.shape_cast %94 : vector<1x10x2xf32> to vector<10x2xf32>
    %cst_42 = arith.constant 0.000000e+00 : f32
    %96 = vector.broadcast %cst_42 : f32 to vector<10x2xf32>
    %97 = arith.cmpf one, %90, %96 : vector<10x2xf32>
    %cst_43 = arith.constant 0xFF800000 : f32
    %98 = vector.broadcast %cst_43 : f32 to vector<10x2xf32>
    %99 = arith.select %97, %95, %98 : vector<10x2xi1>, vector<10x2xf32>
    %cst_44 = arith.constant dense<0xFF800000> : vector<2xf32>
    %100 = vector.multi_reduction <maximumf>, %99, %cst_44 [0] : vector<10x2xf32> to vector<2xf32>
    %101 = vector.shape_cast %100 : vector<2xf32> to vector<1x2xf32>
    %102 = vector.broadcast %101 : vector<1x2xf32> to vector<10x2xf32>
    %103 = arith.cmpf oge, %99, %102 : vector<10x2xf32>
    %104 = arith.andi %97, %103 : vector<10x2xi1>
    %c10_i32_45 = arith.constant 10 : i32
    %105 = vector.broadcast %c10_i32_45 : i32 to vector<10x2xi32>
    %106 = arith.select %104, %0, %105 : vector<10x2xi1>, vector<10x2xi32>
    %cst_46 = arith.constant dense<2147483647> : vector<2xi32>
    %107 = vector.multi_reduction <minsi>, %106, %cst_46 [0] : vector<10x2xi32> to vector<2xi32>
    %108 = vector.shape_cast %107 : vector<2xi32> to vector<1x2xi32>
    %109 = vector.broadcast %108 : vector<1x2xi32> to vector<10x2xi32>
    %110 = arith.cmpi eq, %0, %109 : vector<10x2xi32>
    %111 = arith.extui %110 : vector<10x2xi1> to vector<10x2xi32>
    %112 = arith.sitofp %111 : vector<10x2xi32> to vector<10x2xf32>
    %113 = arith.subf %90, %112 : vector<10x2xf32>
    %c0_47 = arith.constant 0 : index
    %c0_48 = arith.constant 0 : index
    %c0_49 = arith.constant 0 : index
    %114 = vector.load %arg2[%c0_47, %c0_48, %c0_49] : memref<4x10x2xf32, #tpu.memory_space<vmem>>, vector<1x10x2xf32>
    %115 = vector.shape_cast %114 : vector<1x10x2xf32> to vector<10x2xf32>
    %116 = arith.addf %115, %112 : vector<10x2xf32>
    %c0_50 = arith.constant 0 : index
    %c0_51 = arith.constant 0 : index
    %c0_52 = arith.constant 0 : index
    %117 = vector.load %arg2[%c0_50, %c0_51, %c0_52] : memref<4x10x2xf32, #tpu.memory_space<vmem>>, vector<1x10x2xf32>
    %118 = vector.shape_cast %117 : vector<1x10x2xf32> to vector<10x2xf32>
    %119 = vector.shape_cast %116 : vector<10x2xf32> to vector<1x10x2xf32>
    tpu.vector_store %arg2[%c0_50, %c0_51, %c0_52], %119 {strides = array<i32>} : memref<4x10x2xf32, #tpu.memory_space<vmem>>, vector<1x10x2xf32>,
    %c1_53 = arith.constant 1 : index
    %c0_54 = arith.constant 0 : index
    %c0_55 = arith.constant 0 : index
    %120 = vector.load %arg1[%c1_53, %c0_54, %c0_55] : memref<4x10x2xf32, #tpu.memory_space<vmem>>, vector<1x10x2xf32>
    %121 = vector.shape_cast %120 : vector<1x10x2xf32> to vector<10x2xf32>
    %cst_56 = arith.constant 0.000000e+00 : f32
    %122 = vector.broadcast %cst_56 : f32 to vector<10x2xf32>
    %123 = arith.cmpf one, %113, %122 : vector<10x2xf32>
    %cst_57 = arith.constant 0xFF800000 : f32
    %124 = vector.broadcast %cst_57 : f32 to vector<10x2xf32>
    %125 = arith.select %123, %121, %124 : vector<10x2xi1>, vector<10x2xf32>
    %cst_58 = arith.constant dense<0xFF800000> : vector<2xf32>
    %126 = vector.multi_reduction <maximumf>, %125, %cst_58 [0] : vector<10x2xf32> to vector<2xf32>
    %127 = vector.shape_cast %126 : vector<2xf32> to vector<1x2xf32>
    %128 = vector.broadcast %127 : vector<1x2xf32> to vector<10x2xf32>
    %129 = arith.cmpf oge, %125, %128 : vector<10x2xf32>
    %130 = arith.andi %123, %129 : vector<10x2xi1>
    %c10_i32_59 = arith.constant 10 : i32
    %131 = vector.broadcast %c10_i32_59 : i32 to vector<10x2xi32>
    %132 = arith.select %130, %0, %131 : vector<10x2xi1>, vector<10x2xi32>
    %cst_60 = arith.constant dense<2147483647> : vector<2xi32>
    %133 = vector.multi_reduction <minsi>, %132, %cst_60 [0] : vector<10x2xi32> to vector<2xi32>
    %134 = vector.shape_cast %133 : vector<2xi32> to vector<1x2xi32>
    %135 = vector.broadcast %134 : vector<1x2xi32> to vector<10x2xi32>
    %136 = arith.cmpi eq, %0, %135 : vector<10x2xi32>
    %137 = arith.extui %136 : vector<10x2xi1> to vector<10x2xi32>
    %138 = arith.sitofp %137 : vector<10x2xi32> to vector<10x2xf32>
    %139 = arith.subf %113, %138 : vector<10x2xf32>
    %c1_61 = arith.constant 1 : index
    %c0_62 = arith.constant 0 : index
    %c0_63 = arith.constant 0 : index
    %140 = vector.load %arg2[%c1_61, %c0_62, %c0_63] : memref<4x10x2xf32, #tpu.memory_space<vmem>>, vector<1x10x2xf32>
    %141 = vector.shape_cast %140 : vector<1x10x2xf32> to vector<10x2xf32>
    %142 = arith.addf %141, %138 : vector<10x2xf32>
    %c1_64 = arith.constant 1 : index
    %c0_65 = arith.constant 0 : index
    %c0_66 = arith.constant 0 : index
    %143 = vector.load %arg2[%c1_64, %c0_65, %c0_66] : memref<4x10x2xf32, #tpu.memory_space<vmem>>, vector<1x10x2xf32>
    %144 = vector.shape_cast %143 : vector<1x10x2xf32> to vector<10x2xf32>
    %145 = vector.shape_cast %142 : vector<10x2xf32> to vector<1x10x2xf32>
    tpu.vector_store %arg2[%c1_64, %c0_65, %c0_66], %145 {strides = array<i32>} : memref<4x10x2xf32, #tpu.memory_space<vmem>>, vector<1x10x2xf32>,
    %c2_67 = arith.constant 2 : index
    %c0_68 = arith.constant 0 : index
    %c0_69 = arith.constant 0 : index
    %146 = vector.load %arg1[%c2_67, %c0_68, %c0_69] : memref<4x10x2xf32, #tpu.memory_space<vmem>>, vector<1x10x2xf32>
    %147 = vector.shape_cast %146 : vector<1x10x2xf32> to vector<10x2xf32>
    %cst_70 = arith.constant 0.000000e+00 : f32
    %148 = vector.broadcast %cst_70 : f32 to vector<10x2xf32>
    %149 = arith.cmpf one, %139, %148 : vector<10x2xf32>
    %cst_71 = arith.constant 0xFF800000 : f32
    %150 = vector.broadcast %cst_71 : f32 to vector<10x2xf32>
    %151 = arith.select %149, %147, %150 : vector<10x2xi1>, vector<10x2xf32>
    %cst_72 = arith.constant dense<0xFF800000> : vector<2xf32>
    %152 = vector.multi_reduction <maximumf>, %151, %cst_72 [0] : vector<10x2xf32> to vector<2xf32>
    %153 = vector.shape_cast %152 : vector<2xf32> to vector<1x2xf32>
    %154 = vector.broadcast %153 : vector<1x2xf32> to vector<10x2xf32>
    %155 = arith.cmpf oge, %151, %154 : vector<10x2xf32>
    %156 = arith.andi %149, %155 : vector<10x2xi1>
    %c10_i32_73 = arith.constant 10 : i32
    %157 = vector.broadcast %c10_i32_73 : i32 to vector<10x2xi32>
    %158 = arith.select %156, %0, %157 : vector<10x2xi1>, vector<10x2xi32>
    %cst_74 = arith.constant dense<2147483647> : vector<2xi32>
    %159 = vector.multi_reduction <minsi>, %158, %cst_74 [0] : vector<10x2xi32> to vector<2xi32>
    %160 = vector.shape_cast %159 : vector<2xi32> to vector<1x2xi32>
    %161 = vector.broadcast %160 : vector<1x2xi32> to vector<10x2xi32>
    %162 = arith.cmpi eq, %0, %161 : vector<10x2xi32>
    %163 = arith.extui %162 : vector<10x2xi1> to vector<10x2xi32>
    %164 = arith.sitofp %163 : vector<10x2xi32> to vector<10x2xf32>
    %165 = arith.subf %139, %164 : vector<10x2xf32>
    %c2_75 = arith.constant 2 : index
    %c0_76 = arith.constant 0 : index
    %c0_77 = arith.constant 0 : index
    %166 = vector.load %arg2[%c2_75, %c0_76, %c0_77] : memref<4x10x2xf32, #tpu.memory_space<vmem>>, vector<1x10x2xf32>
    %167 = vector.shape_cast %166 : vector<1x10x2xf32> to vector<10x2xf32>
    %168 = arith.addf %167, %164 : vector<10x2xf32>
    %c2_78 = arith.constant 2 : index
    %c0_79 = arith.constant 0 : index
    %c0_80 = arith.constant 0 : index
    %169 = vector.load %arg2[%c2_78, %c0_79, %c0_80] : memref<4x10x2xf32, #tpu.memory_space<vmem>>, vector<1x10x2xf32>
    %170 = vector.shape_cast %169 : vector<1x10x2xf32> to vector<10x2xf32>
    %171 = vector.shape_cast %168 : vector<10x2xf32> to vector<1x10x2xf32>
    tpu.vector_store %arg2[%c2_78, %c0_79, %c0_80], %171 {strides = array<i32>} : memref<4x10x2xf32, #tpu.memory_space<vmem>>, vector<1x10x2xf32>,
    %c3_81 = arith.constant 3 : index
    %c0_82 = arith.constant 0 : index
    %c0_83 = arith.constant 0 : index
    %172 = vector.load %arg1[%c3_81, %c0_82, %c0_83] : memref<4x10x2xf32, #tpu.memory_space<vmem>>, vector<1x10x2xf32>
    %173 = vector.shape_cast %172 : vector<1x10x2xf32> to vector<10x2xf32>
    %cst_84 = arith.constant 0.000000e+00 : f32
    %174 = vector.broadcast %cst_84 : f32 to vector<10x2xf32>
    %175 = arith.cmpf one, %165, %174 : vector<10x2xf32>
    %cst_85 = arith.constant 0xFF800000 : f32
    %176 = vector.broadcast %cst_85 : f32 to vector<10x2xf32>
    %177 = arith.select %175, %173, %176 : vector<10x2xi1>, vector<10x2xf32>
    %cst_86 = arith.constant dense<0xFF800000> : vector<2xf32>
    %178 = vector.multi_reduction <maximumf>, %177, %cst_86 [0] : vector<10x2xf32> to vector<2xf32>
    %179 = vector.shape_cast %178 : vector<2xf32> to vector<1x2xf32>
    %180 = vector.broadcast %179 : vector<1x2xf32> to vector<10x2xf32>
    %181 = arith.cmpf oge, %177, %180 : vector<10x2xf32>
    %182 = arith.andi %175, %181 : vector<10x2xi1>
    %c10_i32_87 = arith.constant 10 : i32
    %183 = vector.broadcast %c10_i32_87 : i32 to vector<10x2xi32>
    %184 = arith.select %182, %0, %183 : vector<10x2xi1>, vector<10x2xi32>
    %cst_88 = arith.constant dense<2147483647> : vector<2xi32>
    %185 = vector.multi_reduction <minsi>, %184, %cst_88 [0] : vector<10x2xi32> to vector<2xi32>
    %186 = vector.shape_cast %185 : vector<2xi32> to vector<1x2xi32>
    %187 = vector.broadcast %186 : vector<1x2xi32> to vector<10x2xi32>
    %188 = arith.cmpi eq, %0, %187 : vector<10x2xi32>
    %189 = arith.extui %188 : vector<10x2xi1> to vector<10x2xi32>
    %190 = arith.sitofp %189 : vector<10x2xi32> to vector<10x2xf32>
    %191 = arith.subf %165, %190 : vector<10x2xf32>
    %c3_89 = arith.constant 3 : index
    %c0_90 = arith.constant 0 : index
    %c0_91 = arith.constant 0 : index
    %192 = vector.load %arg2[%c3_89, %c0_90, %c0_91] : memref<4x10x2xf32, #tpu.memory_space<vmem>>, vector<1x10x2xf32>
    %193 = vector.shape_cast %192 : vector<1x10x2xf32> to vector<10x2xf32>
    %194 = arith.addf %193, %190 : vector<10x2xf32>
    %c3_92 = arith.constant 3 : index
    %c0_93 = arith.constant 0 : index
    %c0_94 = arith.constant 0 : index
    %195 = vector.load %arg2[%c3_92, %c0_93, %c0_94] : memref<4x10x2xf32, #tpu.memory_space<vmem>>, vector<1x10x2xf32>
    %196 = vector.shape_cast %195 : vector<1x10x2xf32> to vector<10x2xf32>
    %197 = vector.shape_cast %194 : vector<10x2xf32> to vector<1x10x2xf32>
    tpu.vector_store %arg2[%c3_92, %c0_93, %c0_94], %197 {strides = array<i32>} : memref<4x10x2xf32, #tpu.memory_space<vmem>>, vector<1x10x2xf32>,
    %c0_95 = arith.constant 0 : index
    %c0_96 = arith.constant 0 : index
    %c0_97 = arith.constant 0 : index
    %198 = vector.load %arg1[%c0_95, %c0_96, %c0_97] : memref<4x10x2xf32, #tpu.memory_space<vmem>>, vector<1x10x2xf32>
    %199 = vector.shape_cast %198 : vector<1x10x2xf32> to vector<10x2xf32>
    %cst_98 = arith.constant 0.000000e+00 : f32
    %200 = vector.broadcast %cst_98 : f32 to vector<10x2xf32>
    %201 = arith.cmpf one, %191, %200 : vector<10x2xf32>
    %cst_99 = arith.constant 0xFF800000 : f32
    %202 = vector.broadcast %cst_99 : f32 to vector<10x2xf32>
    %203 = arith.select %201, %199, %202 : vector<10x2xi1>, vector<10x2xf32>
    %cst_100 = arith.constant dense<0xFF800000> : vector<2xf32>
    %204 = vector.multi_reduction <maximumf>, %203, %cst_100 [0] : vector<10x2xf32> to vector<2xf32>
    %205 = vector.shape_cast %204 : vector<2xf32> to vector<1x2xf32>
    %206 = vector.broadcast %205 : vector<1x2xf32> to vector<10x2xf32>
    %207 = arith.cmpf oge, %203, %206 : vector<10x2xf32>
    %208 = arith.andi %201, %207 : vector<10x2xi1>
    %c10_i32_101 = arith.constant 10 : i32
    %209 = vector.broadcast %c10_i32_101 : i32 to vector<10x2xi32>
    %210 = arith.select %208, %0, %209 : vector<10x2xi1>, vector<10x2xi32>
    %cst_102 = arith.constant dense<2147483647> : vector<2xi32>
    %211 = vector.multi_reduction <minsi>, %210, %cst_102 [0] : vector<10x2xi32> to vector<2xi32>
    %212 = vector.shape_cast %211 : vector<2xi32> to vector<1x2xi32>
    %213 = vector.broadcast %212 : vector<1x2xi32> to vector<10x2xi32>
    %214 = arith.cmpi eq, %0, %213 : vector<10x2xi32>
    %215 = arith.extui %214 : vector<10x2xi1> to vector<10x2xi32>
    %216 = arith.sitofp %215 : vector<10x2xi32> to vector<10x2xf32>
    %217 = arith.subf %191, %216 : vector<10x2xf32>
    %c0_103 = arith.constant 0 : index
    %c0_104 = arith.constant 0 : index
    %c0_105 = arith.constant 0 : index
    %218 = vector.load %arg2[%c0_103, %c0_104, %c0_105] : memref<4x10x2xf32, #tpu.memory_space<vmem>>, vector<1x10x2xf32>
    %219 = vector.shape_cast %218 : vector<1x10x2xf32> to vector<10x2xf32>
    %220 = arith.addf %219, %216 : vector<10x2xf32>
    %c0_106 = arith.constant 0 : index
    %c0_107 = arith.constant 0 : index
    %c0_108 = arith.constant 0 : index
    %221 = vector.load %arg2[%c0_106, %c0_107, %c0_108] : memref<4x10x2xf32, #tpu.memory_space<vmem>>, vector<1x10x2xf32>
    %222 = vector.shape_cast %221 : vector<1x10x2xf32> to vector<10x2xf32>
    %223 = vector.shape_cast %220 : vector<10x2xf32> to vector<1x10x2xf32>
    tpu.vector_store %arg2[%c0_106, %c0_107, %c0_108], %223 {strides = array<i32>} : memref<4x10x2xf32, #tpu.memory_space<vmem>>, vector<1x10x2xf32>,
    %c1_109 = arith.constant 1 : index
    %c0_110 = arith.constant 0 : index
    %c0_111 = arith.constant 0 : index
    %224 = vector.load %arg1[%c1_109, %c0_110, %c0_111] : memref<4x10x2xf32, #tpu.memory_space<vmem>>, vector<1x10x2xf32>
    %225 = vector.shape_cast %224 : vector<1x10x2xf32> to vector<10x2xf32>
    %cst_112 = arith.constant 0.000000e+00 : f32
    %226 = vector.broadcast %cst_112 : f32 to vector<10x2xf32>
    %227 = arith.cmpf one, %217, %226 : vector<10x2xf32>
    %cst_113 = arith.constant 0xFF800000 : f32
    %228 = vector.broadcast %cst_113 : f32 to vector<10x2xf32>
    %229 = arith.select %227, %225, %228 : vector<10x2xi1>, vector<10x2xf32>
    %cst_114 = arith.constant dense<0xFF800000> : vector<2xf32>
    %230 = vector.multi_reduction <maximumf>, %229, %cst_114 [0] : vector<10x2xf32> to vector<2xf32>
    %231 = vector.shape_cast %230 : vector<2xf32> to vector<1x2xf32>
    %232 = vector.broadcast %231 : vector<1x2xf32> to vector<10x2xf32>
    %233 = arith.cmpf oge, %229, %232 : vector<10x2xf32>
    %234 = arith.andi %227, %233 : vector<10x2xi1>
    %c10_i32_115 = arith.constant 10 : i32
    %235 = vector.broadcast %c10_i32_115 : i32 to vector<10x2xi32>
    %236 = arith.select %234, %0, %235 : vector<10x2xi1>, vector<10x2xi32>
    %cst_116 = arith.constant dense<2147483647> : vector<2xi32>
    %237 = vector.multi_reduction <minsi>, %236, %cst_116 [0] : vector<10x2xi32> to vector<2xi32>
    %238 = vector.shape_cast %237 : vector<2xi32> to vector<1x2xi32>
    %239 = vector.broadcast %238 : vector<1x2xi32> to vector<10x2xi32>
    %240 = arith.cmpi eq, %0, %239 : vector<10x2xi32>
    %241 = arith.extui %240 : vector<10x2xi1> to vector<10x2xi32>
    %242 = arith.sitofp %241 : vector<10x2xi32> to vector<10x2xf32>
    %243 = arith.subf %217, %242 : vector<10x2xf32>
    %c1_117 = arith.constant 1 : index
    %c0_118 = arith.constant 0 : index
    %c0_119 = arith.constant 0 : index
    %244 = vector.load %arg2[%c1_117, %c0_118, %c0_119] : memref<4x10x2xf32, #tpu.memory_space<vmem>>, vector<1x10x2xf32>
    %245 = vector.shape_cast %244 : vector<1x10x2xf32> to vector<10x2xf32>
    %246 = arith.addf %245, %242 : vector<10x2xf32>
    %c1_120 = arith.constant 1 : index
    %c0_121 = arith.constant 0 : index
    %c0_122 = arith.constant 0 : index
    %247 = vector.load %arg2[%c1_120, %c0_121, %c0_122] : memref<4x10x2xf32, #tpu.memory_space<vmem>>, vector<1x10x2xf32>
    %248 = vector.shape_cast %247 : vector<1x10x2xf32> to vector<10x2xf32>
    %249 = vector.shape_cast %246 : vector<10x2xf32> to vector<1x10x2xf32>
    tpu.vector_store %arg2[%c1_120, %c0_121, %c0_122], %249 {strides = array<i32>} : memref<4x10x2xf32, #tpu.memory_space<vmem>>, vector<1x10x2xf32>,
    %c2_123 = arith.constant 2 : index
    %c0_124 = arith.constant 0 : index
    %c0_125 = arith.constant 0 : index
    %250 = vector.load %arg1[%c2_123, %c0_124, %c0_125] : memref<4x10x2xf32, #tpu.memory_space<vmem>>, vector<1x10x2xf32>
    %251 = vector.shape_cast %250 : vector<1x10x2xf32> to vector<10x2xf32>
    %cst_126 = arith.constant 0.000000e+00 : f32
    %252 = vector.broadcast %cst_126 : f32 to vector<10x2xf32>
    %253 = arith.cmpf one, %243, %252 : vector<10x2xf32>
    %cst_127 = arith.constant 0xFF800000 : f32
    %254 = vector.broadcast %cst_127 : f32 to vector<10x2xf32>
    %255 = arith.select %253, %251, %254 : vector<10x2xi1>, vector<10x2xf32>
    %cst_128 = arith.constant dense<0xFF800000> : vector<2xf32>
    %256 = vector.multi_reduction <maximumf>, %255, %cst_128 [0] : vector<10x2xf32> to vector<2xf32>
    %257 = vector.shape_cast %256 : vector<2xf32> to vector<1x2xf32>
    %258 = vector.broadcast %257 : vector<1x2xf32> to vector<10x2xf32>
    %259 = arith.cmpf oge, %255, %258 : vector<10x2xf32>
    %260 = arith.andi %253, %259 : vector<10x2xi1>
    %c10_i32_129 = arith.constant 10 : i32
    %261 = vector.broadcast %c10_i32_129 : i32 to vector<10x2xi32>
    %262 = arith.select %260, %0, %261 : vector<10x2xi1>, vector<10x2xi32>
    %cst_130 = arith.constant dense<2147483647> : vector<2xi32>
    %263 = vector.multi_reduction <minsi>, %262, %cst_130 [0] : vector<10x2xi32> to vector<2xi32>
    %264 = vector.shape_cast %263 : vector<2xi32> to vector<1x2xi32>
    %265 = vector.broadcast %264 : vector<1x2xi32> to vector<10x2xi32>
    %266 = arith.cmpi eq, %0, %265 : vector<10x2xi32>
    %267 = arith.extui %266 : vector<10x2xi1> to vector<10x2xi32>
    %268 = arith.sitofp %267 : vector<10x2xi32> to vector<10x2xf32>
    %269 = arith.subf %243, %268 : vector<10x2xf32>
    %c2_131 = arith.constant 2 : index
    %c0_132 = arith.constant 0 : index
    %c0_133 = arith.constant 0 : index
    %270 = vector.load %arg2[%c2_131, %c0_132, %c0_133] : memref<4x10x2xf32, #tpu.memory_space<vmem>>, vector<1x10x2xf32>
    %271 = vector.shape_cast %270 : vector<1x10x2xf32> to vector<10x2xf32>
    %272 = arith.addf %271, %268 : vector<10x2xf32>
    %c2_134 = arith.constant 2 : index
    %c0_135 = arith.constant 0 : index
    %c0_136 = arith.constant 0 : index
    %273 = vector.load %arg2[%c2_134, %c0_135, %c0_136] : memref<4x10x2xf32, #tpu.memory_space<vmem>>, vector<1x10x2xf32>
    %274 = vector.shape_cast %273 : vector<1x10x2xf32> to vector<10x2xf32>
    %275 = vector.shape_cast %272 : vector<10x2xf32> to vector<1x10x2xf32>
    tpu.vector_store %arg2[%c2_134, %c0_135, %c0_136], %275 {strides = array<i32>} : memref<4x10x2xf32, #tpu.memory_space<vmem>>, vector<1x10x2xf32>,
    %c3_137 = arith.constant 3 : index
    %c0_138 = arith.constant 0 : index
    %c0_139 = arith.constant 0 : index
    %276 = vector.load %arg1[%c3_137, %c0_138, %c0_139] : memref<4x10x2xf32, #tpu.memory_space<vmem>>, vector<1x10x2xf32>
    %277 = vector.shape_cast %276 : vector<1x10x2xf32> to vector<10x2xf32>
    %cst_140 = arith.constant 0.000000e+00 : f32
    %278 = vector.broadcast %cst_140 : f32 to vector<10x2xf32>
    %279 = arith.cmpf one, %269, %278 : vector<10x2xf32>
    %cst_141 = arith.constant 0xFF800000 : f32
    %280 = vector.broadcast %cst_141 : f32 to vector<10x2xf32>
    %281 = arith.select %279, %277, %280 : vector<10x2xi1>, vector<10x2xf32>
    %cst_142 = arith.constant dense<0xFF800000> : vector<2xf32>
    %282 = vector.multi_reduction <maximumf>, %281, %cst_142 [0] : vector<10x2xf32> to vector<2xf32>
    %283 = vector.shape_cast %282 : vector<2xf32> to vector<1x2xf32>
    %284 = vector.broadcast %283 : vector<1x2xf32> to vector<10x2xf32>
    %285 = arith.cmpf oge, %281, %284 : vector<10x2xf32>
    %286 = arith.andi %279, %285 : vector<10x2xi1>
    %c10_i32_143 = arith.constant 10 : i32
    %287 = vector.broadcast %c10_i32_143 : i32 to vector<10x2xi32>
    %288 = arith.select %286, %0, %287 : vector<10x2xi1>, vector<10x2xi32>
    %cst_144 = arith.constant dense<2147483647> : vector<2xi32>
    %289 = vector.multi_reduction <minsi>, %288, %cst_144 [0] : vector<10x2xi32> to vector<2xi32>
    %290 = vector.shape_cast %289 : vector<2xi32> to vector<1x2xi32>
    %291 = vector.broadcast %290 : vector<1x2xi32> to vector<10x2xi32>
    %292 = arith.cmpi eq, %0, %291 : vector<10x2xi32>
    %293 = arith.extui %292 : vector<10x2xi1> to vector<10x2xi32>
    %294 = arith.sitofp %293 : vector<10x2xi32> to vector<10x2xf32>
    %c3_145 = arith.constant 3 : index
    %c0_146 = arith.constant 0 : index
    %c0_147 = arith.constant 0 : index
    %295 = vector.load %arg2[%c3_145, %c0_146, %c0_147] : memref<4x10x2xf32, #tpu.memory_space<vmem>>, vector<1x10x2xf32>
    %296 = vector.shape_cast %295 : vector<1x10x2xf32> to vector<10x2xf32>
    %297 = arith.addf %296, %294 : vector<10x2xf32>
    %c3_148 = arith.constant 3 : index
    %c0_149 = arith.constant 0 : index
    %c0_150 = arith.constant 0 : index
    %298 = vector.load %arg2[%c3_148, %c0_149, %c0_150] : memref<4x10x2xf32, #tpu.memory_space<vmem>>, vector<1x10x2xf32>
    %299 = vector.shape_cast %298 : vector<1x10x2xf32> to vector<10x2xf32>
    %300 = vector.shape_cast %297 : vector<10x2xf32> to vector<1x10x2xf32>
    tpu.vector_store %arg2[%c3_148, %c0_149, %c0_150], %300 {strides = array<i32>} : memref<4x10x2xf32, #tpu.memory_space<vmem>>, vector<1x10x2xf32>,
    return
  }
  func.func @transform_0(%arg0: i32) -> (i32, i32, i32) {
    %c0_i32 = arith.constant 0 : i32
    %c0_i32_0 = arith.constant 0 : i32
    %c0_i32_1 = arith.constant 0 : i32
    return %c0_i32, %c0_i32_0, %arg0 : i32, i32, i32
  }
  func.func @transform_1(%arg0: i32) -> (i32, i32, i32) {
    %c0_i32 = arith.constant 0 : i32
    %c0_i32_0 = arith.constant 0 : i32
    %c0_i32_1 = arith.constant 0 : i32
    return %c0_i32, %c0_i32_0, %arg0 : i32, i32, i32
  }
}

</mosaic_0001>

<bundles_post_ra>
// kernel: tpu_custom_call.1
= control target key start
LH: loop header
LB: loop body
LE: loop exit
PB: predicated region body
PF: predicated region fallthrough
CT: control target
= control target key end

     0   :  { %vm16_vm0 = vcmask 15360   ;;  %vm18_vm1 = vcmask 9216   ;;  %v8_v6 = vlaneseq  ;;  %v653_v25 = vmov 0.0   ;;  %s1070_s0 = inlined_call_operand.vmem [shape: f32[4,10,2], index: 0, kind: input, shape index: {}]   ;;  %s1071_s1 = inlined_call_operand.vmem [shape: f32[4,10,2], index: 1, kind: output, shape index: {}]  }
   0x1   :  { %v667_v0 = vld [vmem:[%s1070_s0] sm:$0xff]  ;;  %v12_v1 = vld [vmem:[%s1070_s0 + $0x8] sm:$0x3]  ;;  %v696_v29 = vld [vmem:[%s1070_s0 + $0x10] sm:$0xff] }
   0x2   :  { %v17_v2 = vsel %vm16_vm0, %v667_v0, -inf  ;;  %v19_v3 = vsel %vm18_vm1, %v12_v1, -inf  ;;  %v675_v9 = vshrl.u32 %v8_v6, 7  ;;  %v583_v31 = vld [vmem:[%s1070_s0 + $0x18] sm:$0x3]  ;;  %v739_v59 = vld [vmem:[%s1070_s0 + $0x20] sm:$0xff] }
   0x3   :  { %v20_v4 = vmax.f32 %v17_v2, %v19_v3  ;;  %v589_v61 = vld [vmem:[%s1070_s0 + $0x28] sm:$0x3] }
   0x4   :  { %v678_v12 = vadd.s32 8, %v675_v9 }
   0x5   :  { %v21_v5 = vrot.slane %v20_v4, 4 }
   0x7   :  { %v22_v7 = vmax.f32 %v20_v4, %v21_v5 }
   0x9   :  { %v23_v8 = vrot.slane %v22_v7, 2 }
   0xb   :  { %v24_v10 = vmax.f32 %v22_v7, %v23_v8 }
   0xd   :  { %v25_v11 = vrot.slane %v24_v10, 1 }
   0xf   :  { %v26_v13 = vmax.f32 %v24_v10, %v25_v11 }
  0x11   :  { %vm27_vm2 = vcmp.ge.f32.partialorder %v667_v0, %v26_v13  ;;  %vm28_vm3 = vcmp.ge.f32.partialorder %v12_v1, %v26_v13 }
  0x12   :  { %v31_v14 = vsel %vm27_vm2, %v675_v9, 10  ;;  %v32_v15 = vsel %vm28_vm3, %v678_v12, 10 }
  0x13   :  { %v33_v16 = vsel %vm16_vm0, %v31_v14, 2147483647  ;;  %v34_v17 = vsel %vm18_vm1, %v32_v15, 2147483647 }
  0x14   :  { %vm35_vm4 = vcmp.lt.s32.totalorder %v33_v16, %v34_v17 }
  0x15   :  { %v36_v18 = vsel %vm35_vm4, %v33_v16, %v34_v17 }
  0x16   :  { %v37_v19 = vrot.slane %v36_v18, 4 }
  0x18   :  { %vm38_vm5 = vcmp.lt.s32.totalorder %v36_v18, %v37_v19 }
  0x19   :  { %v39_v20 = vsel %vm38_vm5, %v36_v18, %v37_v19 }
  0x1a   :  { %v40_v21 = vrot.slane %v39_v20, 2 }
  0x1c   :  { %vm41_vm6 = vcmp.lt.s32.totalorder %v39_v20, %v40_v21 }
  0x1d   :  { %v42_v22 = vsel %vm41_vm6, %v39_v20, %v40_v21 }
  0x1e   :  { %v43_v23 = vrot.slane %v42_v22, 1 }
  0x20   :  { %vm44_vm7 = vcmp.lt.s32.totalorder %v42_v22, %v43_v23 }
  0x21   :  { %v45_v24 = vsel %vm44_vm7, %v42_v22, %v43_v23 }
  0x22   :  { %vm46_vm8 = vcmp.eq.s32.totalorder %v675_v9, %v45_v24  ;;  %vm47_vm9 = vcmp.eq.s32.totalorder %v678_v12, %v45_v24 }
  0x23   :  { %v580_v26 = vsel %vm46_vm8, 1.0, %v653_v25  ;;  %v581_v27 = vsel %vm47_vm9, 1.0, %v653_v25 }
  0x24   :  { %v52_v28 = vsub.f32 1.0, %v580_v26  ;;  %54 = vst.msk [vmem:[%s1071_s1] sm:$0xff] %vm16_vm0, %v580_v26  ;;  %v53_v30 = vsub.f32 1.0, %v581_v27 }
  0x25   :  { %55 = vst.msk [vmem:[%s1071_s1 + $0x8] sm:$0x3] %vm18_vm1, %v581_v27  ;;  %v770_v27 = vld [vmem:[%s1070_s0 + $0x30] sm:$0xff] }
  0x26   :  { %vm705_vm10 = vcmp.ne.f32.partialorder %v52_v28, 0.0  ;;  %vm709_vm11 = vcmp.ne.f32.partialorder %v53_v30, 0.0 }
  0x27   :  { %v61_v34 = vsel %vm705_vm10, %v696_v29, -inf  ;;  %v62_v35 = vsel %vm709_vm11, %v583_v31, -inf }
  0x28   :  { %v63_v36 = vsel %vm16_vm0, %v61_v34, -inf  ;;  %v64_v37 = vsel %vm18_vm1, %v62_v35, -inf }
  0x29   :  { %v65_v38 = vmax.f32 %v63_v36, %v64_v37 }
  0x2b   :  { %v66_v39 = vrot.slane %v65_v38, 4 }
  0x2d   :  { %v67_v40 = vmax.f32 %v65_v38, %v66_v39 }
  0x2f   :  { %v68_v41 = vrot.slane %v67_v40, 2 }
  0x31   :  { %v69_v42 = vmax.f32 %v67_v40, %v68_v41 }
  0x33   :  { %v70_v43 = vrot.slane %v69_v42, 1 }
  0x35   :  { %v71_v44 = vmax.f32 %v69_v42, %v70_v43 }
  0x37   :  { %vm72_vm12 = vcmp.ge.f32.partialorder %v61_v34, %v71_v44  ;;  %vm73_vm13 = vcmp.ge.f32.partialorder %v62_v35, %v71_v44 }
  0x38   :  { %vm74_vm14 = vmand %vm705_vm10, %vm72_vm12 }
  0x39   :  { %vm75_vm15 = vmand %vm709_vm11, %vm73_vm13  ;;  %v76_v45 = vsel %vm74_vm14, %v675_v9, 10 }
  0x3a   :  { %v77_v46 = vsel %vm75_vm15, %v678_v12, 10  ;;  %v78_v47 = vsel %vm16_vm0, %v76_v45, 2147483647 }
  0x3b   :  { %v79_v48 = vsel %vm18_vm1, %v77_v46, 2147483647 }
  0x3c   :  { %vm80_vm2 = vcmp.lt.s32.totalorder %v78_v47, %v79_v48 }
  0x3d   :  { %v81_v49 = vsel %vm80_vm2, %v78_v47, %v79_v48 }
  0x3e   :  { %v82_v50 = vrot.slane %v81_v49, 4 }
  0x40   :  { %vm83_vm3 = vcmp.lt.s32.totalorder %v81_v49, %v82_v50 }
  0x41   :  { %v84_v51 = vsel %vm83_vm3, %v81_v49, %v82_v50 }
  0x42   :  { %v85_v52 = vrot.slane %v84_v51, 2 }
  0x44   :  { %vm86_vm4 = vcmp.lt.s32.totalorder %v84_v51, %v85_v52 }
  0x45   :  { %v87_v53 = vsel %vm86_vm4, %v84_v51, %v85_v52 }
  0x46   :  { %v88_v54 = vrot.slane %v87_v53, 1 }
  0x48   :  { %vm89_vm5 = vcmp.lt.s32.totalorder %v87_v53, %v88_v54 }
  0x49   :  { %v90_v55 = vsel %vm89_vm5, %v87_v53, %v88_v54 }
  0x4a   :  { %vm91_vm6 = vcmp.eq.s32.totalorder %v675_v9, %v90_v55  ;;  %vm92_vm7 = vcmp.eq.s32.totalorder %v678_v12, %v90_v55 }
  0x4b   :  { %v584_v56 = vsel %vm91_vm6, 1.0, %v653_v25  ;;  %v585_v57 = vsel %vm92_vm7, 1.0, %v653_v25 }
  0x4c   :  { %v97_v58 = vsub.f32 %v52_v28, %v584_v56  ;;  %586 = vst.msk [vmem:[%s1071_s1 + $0x10] sm:$0xff] %vm16_vm0, %v584_v56  ;;  %v98_v60 = vsub.f32 %v53_v30, %v585_v57  ;;  %v595_v30 = vld [vmem:[%s1070_s0 + $0x38] sm:$0x3] }
  0x4d   :  { %587 = vst.msk [vmem:[%s1071_s1 + $0x18] sm:$0x3] %vm18_vm1, %v585_v57  ;;  %v195_v57 = vld [vmem:[%s1070_s0 + $0x8] sm:$0x3] }
  0x4e   :  { %vm105_vm8 = vcmp.ne.f32.partialorder %v97_v58, 0.0  ;;  %vm106_vm9 = vcmp.ne.f32.partialorder %v98_v60, 0.0 }
  0x4f   :  { %v107_v62 = vsel %vm105_vm8, %v739_v59, -inf  ;;  %v108_v63 = vsel %vm106_vm9, %v589_v61, -inf }
  0x50   :  { %v109_v1 = vsel %vm16_vm0, %v107_v62, -inf  ;;  %v110_v2 = vsel %vm18_vm1, %v108_v63, -inf }
  0x51   :  { %v111_v3 = vmax.f32 %v109_v1, %v110_v2 }
  0x53   :  { %v112_v4 = vrot.slane %v111_v3, 4 }
  0x55   :  { %v113_v5 = vmax.f32 %v111_v3, %v112_v4 }
  0x57   :  { %v114_v6 = vrot.slane %v113_v5, 2 }
  0x59   :  { %v115_v7 = vmax.f32 %v113_v5, %v114_v6 }
  0x5b   :  { %v116_v8 = vrot.slane %v115_v7, 1 }
  0x5d   :  { %v117_v10 = vmax.f32 %v115_v7, %v116_v8 }
  0x5f   :  { %vm118_vm10 = vcmp.ge.f32.partialorder %v107_v62, %v117_v10  ;;  %vm119_vm11 = vcmp.ge.f32.partialorder %v108_v63, %v117_v10 }
  0x60   :  { %vm120_vm12 = vmand %vm105_vm8, %vm118_vm10 }
  0x61   :  { %vm121_vm13 = vmand %vm106_vm9, %vm119_vm11  ;;  %v122_v11 = vsel %vm120_vm12, %v675_v9, 10 }
  0x62   :  { %v123_v13 = vsel %vm121_vm13, %v678_v12, 10  ;;  %v124_v14 = vsel %vm16_vm0, %v122_v11, 2147483647 }
  0x63   :  { %v125_v15 = vsel %vm18_vm1, %v123_v13, 2147483647 }
  0x64   :  { %vm126_vm14 = vcmp.lt.s32.totalorder %v124_v14, %v125_v15 }
  0x65   :  { %v127_v16 = vsel %vm126_vm14, %v124_v14, %v125_v15 }
  0x66   :  { %v128_v17 = vrot.slane %v127_v16, 4 }
  0x68   :  { %vm129_vm15 = vcmp.lt.s32.totalorder %v127_v16, %v128_v17 }
  0x69   :  { %v130_v18 = vsel %vm129_vm15, %v127_v16, %v128_v17 }
  0x6a   :  { %v131_v19 = vrot.slane %v130_v18, 2 }
  0x6c   :  { %vm132_vm2 = vcmp.lt.s32.totalorder %v130_v18, %v131_v19 }
  0x6d   :  { %v133_v20 = vsel %vm132_vm2, %v130_v18, %v131_v19 }
  0x6e   :  { %v134_v21 = vrot.slane %v133_v20, 1 }
  0x70   :  { %vm135_vm3 = vcmp.lt.s32.totalorder %v133_v20, %v134_v21 }
  0x71   :  { %v136_v22 = vsel %vm135_vm3, %v133_v20, %v134_v21 }
  0x72   :  { %vm137_vm4 = vcmp.eq.s32.totalorder %v675_v9, %v136_v22  ;;  %vm138_vm5 = vcmp.eq.s32.totalorder %v678_v12, %v136_v22 }
  0x73   :  { %v590_v23 = vsel %vm137_vm4, 1.0, %v653_v25  ;;  %v591_v24 = vsel %vm138_vm5, 1.0, %v653_v25 }
  0x74   :  { %v143_v26 = vsub.f32 %v97_v58, %v590_v23  ;;  %592 = vst.msk [vmem:[%s1071_s1 + $0x20] sm:$0xff] %vm16_vm0, %v590_v23  ;;  %v144_v28 = vsub.f32 %v98_v60, %v591_v24 }
  0x75   :  { %593 = vst.msk [vmem:[%s1071_s1 + $0x28] sm:$0x3] %vm18_vm1, %v591_v24  ;;  %v603_v24 = vld [vmem:[%s1070_s0 + $0x18] sm:$0x3] }
  0x76   :  { %vm151_vm6 = vcmp.ne.f32.partialorder %v143_v26, 0.0  ;;  %vm152_vm7 = vcmp.ne.f32.partialorder %v144_v28, 0.0 }
  0x77   :  { %v153_v31 = vsel %vm151_vm6, %v770_v27, -inf  ;;  %v154_v32 = vsel %vm152_vm7, %v595_v30, -inf }
  0x78   :  { %v155_v33 = vsel %vm16_vm0, %v153_v31, -inf  ;;  %v156_v34 = vsel %vm18_vm1, %v154_v32, -inf }
  0x79   :  { %v157_v35 = vmax.f32 %v155_v33, %v156_v34 }
  0x7b   :  { %v158_v36 = vrot.slane %v157_v35, 4 }
  0x7d   :  { %v159_v37 = vmax.f32 %v157_v35, %v158_v36  ;;  %v236_v36 = vld [vmem:[%s1071_s1] sm:$0xff] }
  0x7f   :  { %v160_v38 = vrot.slane %v159_v37, 2 }
  0x81   :  { %v161_v39 = vmax.f32 %v159_v37, %v160_v38  ;;  %v237_v37 = vld [vmem:[%s1071_s1 + $0x8] sm:$0x3] }
  0x83   :  { %v162_v40 = vrot.slane %v161_v39, 1 }
  0x85   :  { %v163_v41 = vmax.f32 %v161_v39, %v162_v40 }
  0x87   :  { %vm164_vm8 = vcmp.ge.f32.partialorder %v153_v31, %v163_v41  ;;  %vm165_vm9 = vcmp.ge.f32.partialorder %v154_v32, %v163_v41 }
  0x88   :  { %vm166_vm10 = vmand %vm151_vm6, %vm164_vm8 }
  0x89   :  { %vm167_vm11 = vmand %vm152_vm7, %vm165_vm9  ;;  %v168_v42 = vsel %vm166_vm10, %v675_v9, 10 }
  0x8a   :  { %v169_v43 = vsel %vm167_vm11, %v678_v12, 10  ;;  %v170_v44 = vsel %vm16_vm0, %v168_v42, 2147483647 }
  0x8b   :  { %v171_v45 = vsel %vm18_vm1, %v169_v43, 2147483647 }
  0x8c   :  { %vm172_vm12 = vcmp.lt.s32.totalorder %v170_v44, %v171_v45 }
  0x8d   :  { %v173_v46 = vsel %vm172_vm12, %v170_v44, %v171_v45 }
  0x8e   :  { %v174_v47 = vrot.slane %v173_v46, 4 }
  0x90   :  { %vm175_vm13 = vcmp.lt.s32.totalorder %v173_v46, %v174_v47 }
  0x91   :  { %v176_v48 = vsel %vm175_vm13, %v173_v46, %v174_v47 }
  0x92   :  { %v177_v49 = vrot.slane %v176_v48, 2 }
  0x94   :  { %vm178_vm14 = vcmp.lt.s32.totalorder %v176_v48, %v177_v49 }
  0x95   :  { %v179_v50 = vsel %vm178_vm14, %v176_v48, %v177_v49 }
  0x96   :  { %v180_v51 = vrot.slane %v179_v50, 1 }
  0x98   :  { %vm181_vm15 = vcmp.lt.s32.totalorder %v179_v50, %v180_v51 }
  0x99   :  { %v182_v52 = vsel %vm181_vm15, %v179_v50, %v180_v51 }
  0x9a   :  { %vm183_vm2 = vcmp.eq.s32.totalorder %v675_v9, %v182_v52  ;;  %vm184_vm3 = vcmp.eq.s32.totalorder %v678_v12, %v182_v52 }
  0x9b   :  { %v596_v53 = vsel %vm183_vm2, 1.0, %v653_v25  ;;  %v597_v54 = vsel %vm184_vm3, 1.0, %v653_v25 }
  0x9c   :  { %v189_v55 = vsub.f32 %v143_v26, %v596_v53  ;;  %598 = vst.msk [vmem:[%s1071_s1 + $0x30] sm:$0xff] %vm16_vm0, %v596_v53  ;;  %v190_v56 = vsub.f32 %v144_v28, %v597_v54 }
  0x9d   :  { %599 = vst.msk [vmem:[%s1071_s1 + $0x38] sm:$0x3] %vm18_vm1, %v597_v54  ;;  %v606_v54 = vld [vmem:[%s1071_s1 + $0x10] sm:$0xff] }
  0x9e   :  { %vm196_vm4 = vcmp.ne.f32.partialorder %v189_v55, 0.0  ;;  %vm197_vm5 = vcmp.ne.f32.partialorder %v190_v56, 0.0 }
  0x9f   :  { %v198_v58 = vsel %vm196_vm4, %v667_v0, -inf  ;;  %v199_v60 = vsel %vm197_vm5, %v195_v57, -inf }
  0xa0   :  { %v200_v61 = vsel %vm16_vm0, %v198_v58, -inf  ;;  %v201_v62 = vsel %vm18_vm1, %v199_v60, -inf }
  0xa1   :  { %v202_v63 = vmax.f32 %v200_v61, %v201_v62 }
  0xa3   :  { %v203_v1 = vrot.slane %v202_v63, 4 }
  0xa5   :  { %v204_v2 = vmax.f32 %v202_v63, %v203_v1 }
  0xa7   :  { %v205_v3 = vrot.slane %v204_v2, 2 }
  0xa9   :  { %v206_v4 = vmax.f32 %v204_v2, %v205_v3 }
  0xab   :  { %v207_v5 = vrot.slane %v206_v4, 1 }
  0xad   :  { %v208_v6 = vmax.f32 %v206_v4, %v207_v5 }
  0xaf   :  { %vm209_vm6 = vcmp.ge.f32.partialorder %v198_v58, %v208_v6  ;;  %vm210_vm7 = vcmp.ge.f32.partialorder %v199_v60, %v208_v6  ;;  %v611_v60 = vld [vmem:[%s1070_s0 + $0x28] sm:$0x3] }
  0xb0   :  { %vm211_vm8 = vmand %vm196_vm4, %vm209_vm6 }
  0xb1   :  { %vm212_vm9 = vmand %vm197_vm5, %vm210_vm7  ;;  %v213_v7 = vsel %vm211_vm8, %v675_v9, 10 }
  0xb2   :  { %v214_v8 = vsel %vm212_vm9, %v678_v12, 10  ;;  %v215_v10 = vsel %vm16_vm0, %v213_v7, 2147483647 }
  0xb3   :  { %v216_v11 = vsel %vm18_vm1, %v214_v8, 2147483647 }
  0xb4   :  { %vm217_vm10 = vcmp.lt.s32.totalorder %v215_v10, %v216_v11 }
  0xb5   :  { %v218_v13 = vsel %vm217_vm10, %v215_v10, %v216_v11 }
  0xb6   :  { %v219_v14 = vrot.slane %v218_v13, 4 }
  0xb8   :  { %vm220_vm11 = vcmp.lt.s32.totalorder %v218_v13, %v219_v14 }
  0xb9   :  { %v221_v15 = vsel %vm220_vm11, %v218_v13, %v219_v14 }
  0xba   :  { %v222_v16 = vrot.slane %v221_v15, 2 }
  0xbc   :  { %vm223_vm12 = vcmp.lt.s32.totalorder %v221_v15, %v222_v16 }
  0xbd   :  { %v224_v17 = vsel %vm223_vm12, %v221_v15, %v222_v16 }
  0xbe   :  { %v225_v18 = vrot.slane %v224_v17, 1 }
  0xc0   :  { %vm226_vm13 = vcmp.lt.s32.totalorder %v224_v17, %v225_v18 }
  0xc1   :  { %v227_v19 = vsel %vm226_vm13, %v224_v17, %v225_v18 }
  0xc2   :  { %vm228_vm14 = vcmp.eq.s32.totalorder %v675_v9, %v227_v19  ;;  %vm229_vm15 = vcmp.eq.s32.totalorder %v678_v12, %v227_v19 }
  0xc3   :  { %v600_v20 = vsel %vm228_vm14, 1.0, %v653_v25  ;;  %v601_v21 = vsel %vm229_vm15, 1.0, %v653_v25 }
  0xc4   :  { %v234_v22 = vsub.f32 %v189_v55, %v600_v20  ;;  %v235_v23 = vsub.f32 %v190_v56, %v601_v21  ;;  %v238_v39 = vadd.f32 %v600_v20, %v236_v36  ;;  %v239_v40 = vadd.f32 %v601_v21, %v237_v37  ;;  %v607_v55 = vld [vmem:[%s1071_s1 + $0x18] sm:$0x3] }
  0xc5   :  { %v619_v36 = vld [vmem:[%s1070_s0 + $0x38] sm:$0x3] }
  0xc6   :  { %vm244_vm2 = vcmp.ne.f32.partialorder %v234_v22, 0.0  ;;  %vm245_vm3 = vcmp.ne.f32.partialorder %v235_v23, 0.0  ;;  %240 = vst.msk [vmem:[%s1071_s1] sm:$0xff] %vm16_vm0, %v238_v39 }
  0xc7   :  { %v246_v26 = vsel %vm244_vm2, %v696_v29, -inf  ;;  %v247_v28 = vsel %vm245_vm3, %v603_v24, -inf  ;;  %241 = vst.msk [vmem:[%s1071_s1 + $0x8] sm:$0x3] %vm18_vm1, %v239_v40 }
  0xc8   :  { %v248_v30 = vsel %vm16_vm0, %v246_v26, -inf  ;;  %v249_v31 = vsel %vm18_vm1, %v247_v28, -inf }
  0xc9   :  { %v250_v32 = vmax.f32 %v248_v30, %v249_v31 }
  0xcb   :  { %v251_v33 = vrot.slane %v250_v32, 4 }
  0xcd   :  { %v252_v34 = vmax.f32 %v250_v32, %v251_v33 }
  0xcf   :  { %v253_v35 = vrot.slane %v252_v34, 2 }
  0xd1   :  { %v254_v38 = vmax.f32 %v252_v34, %v253_v35 }
  0xd3   :  { %v255_v41 = vrot.slane %v254_v38, 1 }
  0xd5   :  { %v256_v42 = vmax.f32 %v254_v38, %v255_v41 }
  0xd7   :  { %vm257_vm4 = vcmp.ge.f32.partialorder %v246_v26, %v256_v42  ;;  %vm258_vm5 = vcmp.ge.f32.partialorder %v247_v28, %v256_v42  ;;  %v614_v26 = vld [vmem:[%s1071_s1 + $0x20] sm:$0xff]  ;;  %v615_v28 = vld [vmem:[%s1071_s1 + $0x28] sm:$0x3] }
  0xd8   :  { %vm259_vm6 = vmand %vm244_vm2, %vm257_vm4 }
  0xd9   :  { %vm260_vm7 = vmand %vm245_vm3, %vm258_vm5  ;;  %v261_v43 = vsel %vm259_vm6, %v675_v9, 10 }
  0xda   :  { %v262_v44 = vsel %vm260_vm7, %v678_v12, 10  ;;  %v263_v45 = vsel %vm16_vm0, %v261_v43, 2147483647 }
  0xdb   :  { %v264_v46 = vsel %vm18_vm1, %v262_v44, 2147483647 }
  0xdc   :  { %vm265_vm8 = vcmp.lt.s32.totalorder %v263_v45, %v264_v46 }
  0xdd   :  { %v266_v47 = vsel %vm265_vm8, %v263_v45, %v264_v46 }
  0xde   :  { %v267_v48 = vrot.slane %v266_v47, 4 }
  0xe0   :  { %vm268_vm9 = vcmp.lt.s32.totalorder %v266_v47, %v267_v48 }
  0xe1   :  { %v269_v49 = vsel %vm268_vm9, %v266_v47, %v267_v48 }
  0xe2   :  { %v270_v50 = vrot.slane %v269_v49, 2 }
  0xe4   :  { %vm271_vm10 = vcmp.lt.s32.totalorder %v269_v49, %v270_v50 }
  0xe5   :  { %v272_v51 = vsel %vm271_vm10, %v269_v49, %v270_v50 }
  0xe6   :  { %v273_v52 = vrot.slane %v272_v51, 1 }
  0xe8   :  { %vm274_vm11 = vcmp.lt.s32.totalorder %v272_v51, %v273_v52 }
  0xe9   :  { %v275_v53 = vsel %vm274_vm11, %v272_v51, %v273_v52 }
  0xea   :  { %vm277_vm12 = vcmp.eq.s32.totalorder %v678_v12, %v275_v53  ;;  %vm276_vm13 = vcmp.eq.s32.totalorder %v675_v9, %v275_v53 }
  0xeb   :  { %v605_v56 = vsel %vm277_vm12, 1.0, %v653_v25  ;;  %v604_v57 = vsel %vm276_vm13, 1.0, %v653_v25 }
  0xec   :  { %v283_v58 = vsub.f32 %v235_v23, %v605_v56  ;;  %v282_v61 = vsub.f32 %v234_v22, %v604_v57  ;;  %v286_v62 = vadd.f32 %v606_v54, %v604_v57  ;;  %v287_v63 = vadd.f32 %v607_v55, %v605_v56 }
  0xee   :  { %vm293_vm14 = vcmp.ne.f32.partialorder %v283_v58, 0.0  ;;  %608 = vst.msk [vmem:[%s1071_s1 + $0x10] sm:$0xff] %vm16_vm0, %v286_v62  ;;  %vm292_vm15 = vcmp.ne.f32.partialorder %v282_v61, 0.0 }
  0xef   :  { %v295_v1 = vsel %vm293_vm14, %v611_v60, -inf  ;;  %v294_v2 = vsel %vm292_vm15, %v739_v59, -inf  ;;  %609 = vst.msk [vmem:[%s1071_s1 + $0x18] sm:$0x3] %vm18_vm1, %v287_v63  ;;  %v622_v60 = vld [vmem:[%s1071_s1 + $0x30] sm:$0xff] }
  0xf0   :  { %v297_v3 = vsel %vm18_vm1, %v295_v1, -inf  ;;  %v296_v4 = vsel %vm16_vm0, %v294_v2, -inf }
  0xf1   :  { %v298_v5 = vmax.f32 %v296_v4, %v297_v3 }
  0xf3   :  { %v299_v6 = vrot.slane %v298_v5, 4 }
  0xf5   :  { %v300_v7 = vmax.f32 %v298_v5, %v299_v6  ;;  %v387_v5 = vld [vmem:[%s1070_s0 + $0x8] sm:$0x3] }
  0xf7   :  { %v301_v8 = vrot.slane %v300_v7, 2 }
  0xf9   :  { %v302_v10 = vmax.f32 %v300_v7, %v301_v8 }
  0xfb   :  { %v303_v11 = vrot.slane %v302_v10, 1 }
  0xfd   :  { %v304_v13 = vmax.f32 %v302_v10, %v303_v11 }
  0xff   :  { %vm305_vm2 = vcmp.ge.f32.partialorder %v294_v2, %v304_v13  ;;  %vm306_vm3 = vcmp.ge.f32.partialorder %v295_v1, %v304_v13 }
 0x100   :  { %vm307_vm4 = vmand %vm292_vm15, %vm305_vm2 }
 0x101   :  { %v309_v14 = vsel %vm307_vm4, %v675_v9, 10  ;;  %vm308_vm5 = vmand %vm293_vm14, %vm306_vm3 }
 0x102   :  { %v311_v15 = vsel %vm16_vm0, %v309_v14, 2147483647  ;;  %v310_v16 = vsel %vm308_vm5, %v678_v12, 10 }
 0x103   :  { %v312_v17 = vsel %vm18_vm1, %v310_v16, 2147483647 }
 0x104   :  { %vm313_vm6 = vcmp.lt.s32.totalorder %v311_v15, %v312_v17 }
 0x105   :  { %v314_v18 = vsel %vm313_vm6, %v311_v15, %v312_v17 }
 0x106   :  { %v315_v19 = vrot.slane %v314_v18, 4 }
 0x108   :  { %vm316_vm7 = vcmp.lt.s32.totalorder %v314_v18, %v315_v19 }
 0x109   :  { %v317_v20 = vsel %vm316_vm7, %v314_v18, %v315_v19 }
 0x10a   :  { %v318_v21 = vrot.slane %v317_v20, 2 }
 0x10c   :  { %vm319_vm8 = vcmp.lt.s32.totalorder %v317_v20, %v318_v21 }
 0x10d   :  { %v320_v22 = vsel %vm319_vm8, %v317_v20, %v318_v21 }
 0x10e   :  { %v321_v23 = vrot.slane %v320_v22, 1 }
 0x110   :  { %vm322_vm9 = vcmp.lt.s32.totalorder %v320_v22, %v321_v23 }
 0x111   :  { %v323_v24 = vsel %vm322_vm9, %v320_v22, %v321_v23 }
 0x112   :  { %vm324_vm10 = vcmp.eq.s32.totalorder %v675_v9, %v323_v24  ;;  %vm325_vm11 = vcmp.eq.s32.totalorder %v678_v12, %v323_v24 }
 0x113   :  { %v612_v30 = vsel %vm324_vm10, 1.0, %v653_v25  ;;  %v613_v31 = vsel %vm325_vm11, 1.0, %v653_v25 }
 0x114   :  { %v330_v32 = vsub.f32 %v282_v61, %v612_v30  ;;  %v334_v33 = vadd.f32 %v614_v26, %v612_v30  ;;  %v335_v34 = vadd.f32 %v615_v28, %v613_v31  ;;  %v331_v35 = vsub.f32 %v283_v58, %v613_v31  ;;  %v623_v61 = vld [vmem:[%s1071_s1 + $0x38] sm:$0x3] }
 0x116   :  { %616 = vst.msk [vmem:[%s1071_s1 + $0x20] sm:$0xff] %vm16_vm0, %v334_v33  ;;  %vm340_vm12 = vcmp.ne.f32.partialorder %v330_v32, 0.0  ;;  %vm341_vm13 = vcmp.ne.f32.partialorder %v331_v35, 0.0  ;;  %v429_v33 = vld [vmem:[%s1071_s1 + $0x8] sm:$0x3] }
 0x117   :  { %v342_v37 = vsel %vm340_vm12, %v770_v27, -inf  ;;  %617 = vst.msk [vmem:[%s1071_s1 + $0x28] sm:$0x3] %vm18_vm1, %v335_v34  ;;  %v343_v38 = vsel %vm341_vm13, %v619_v36, -inf }
 0x118   :  { %v344_v39 = vsel %vm16_vm0, %v342_v37, -inf  ;;  %v345_v40 = vsel %vm18_vm1, %v343_v38, -inf }
 0x119   :  { %v346_v41 = vmax.f32 %v344_v39, %v345_v40  ;;  %v629_v40 = vld [vmem:[%s1070_s0 + $0x18] sm:$0x3] }
 0x11b   :  { %v347_v42 = vrot.slane %v346_v41, 4 }
 0x11d   :  { %v348_v43 = vmax.f32 %v346_v41, %v347_v42 }
 0x11f   :  { %v349_v44 = vrot.slane %v348_v43, 2 }
 0x121   :  { %v350_v45 = vmax.f32 %v348_v43, %v349_v44 }
 0x123   :  { %v351_v46 = vrot.slane %v350_v45, 1 }
 0x125   :  { %v352_v47 = vmax.f32 %v350_v45, %v351_v46 }
 0x127   :  { %vm353_vm14 = vcmp.ge.f32.partialorder %v342_v37, %v352_v47  ;;  %vm354_vm15 = vcmp.ge.f32.partialorder %v343_v38, %v352_v47 }
 0x128   :  { %vm355_vm2 = vmand %vm340_vm12, %vm353_vm14 }
 0x129   :  { %vm356_vm3 = vmand %vm341_vm13, %vm354_vm15  ;;  %v357_v48 = vsel %vm355_vm2, %v675_v9, 10 }
 0x12a   :  { %v358_v49 = vsel %vm356_vm3, %v678_v12, 10  ;;  %v359_v50 = vsel %vm16_vm0, %v357_v48, 2147483647 }
 0x12b   :  { %v360_v51 = vsel %vm18_vm1, %v358_v49, 2147483647 }
 0x12c   :  { %vm361_vm4 = vcmp.lt.s32.totalorder %v359_v50, %v360_v51 }
 0x12d   :  { %v362_v52 = vsel %vm361_vm4, %v359_v50, %v360_v51 }
 0x12e   :  { %v363_v53 = vrot.slane %v362_v52, 4 }
 0x130   :  { %vm364_vm5 = vcmp.lt.s32.totalorder %v362_v52, %v363_v53 }
 0x131   :  { %v365_v54 = vsel %vm364_vm5, %v362_v52, %v363_v53 }
 0x132   :  { %v366_v55 = vrot.slane %v365_v54, 2 }
 0x134   :  { %vm367_vm6 = vcmp.lt.s32.totalorder %v365_v54, %v366_v55 }
 0x135   :  { %v368_v56 = vsel %vm367_vm6, %v365_v54, %v366_v55 }
 0x136   :  { %v369_v57 = vrot.slane %v368_v56, 1 }
 0x138   :  { %vm370_vm7 = vcmp.lt.s32.totalorder %v368_v56, %v369_v57 }
 0x139   :  { %v371_v58 = vsel %vm370_vm7, %v368_v56, %v369_v57 }
 0x13a   :  { %vm372_vm8 = vcmp.eq.s32.totalorder %v675_v9, %v371_v58  ;;  %vm373_vm9 = vcmp.eq.s32.totalorder %v678_v12, %v371_v58 }
 0x13b   :  { %v620_v62 = vsel %vm372_vm8, 1.0, %v653_v25  ;;  %v621_v63 = vsel %vm373_vm9, 1.0, %v653_v25 }
 0x13c   :  { %v378_v1 = vsub.f32 %v330_v32, %v620_v62  ;;  %v382_v2 = vadd.f32 %v622_v60, %v620_v62  ;;  %v379_v3 = vsub.f32 %v331_v35, %v621_v63  ;;  %v383_v4 = vadd.f32 %v623_v61, %v621_v63  ;;  %v428_v32 = vld [vmem:[%s1071_s1] sm:$0xff]  ;;  %v632_v63 = vld [vmem:[%s1071_s1 + $0x10] sm:$0xff] }
 0x13e   :  { %624 = vst.msk [vmem:[%s1071_s1 + $0x30] sm:$0xff] %vm16_vm0, %v382_v2  ;;  %vm388_vm10 = vcmp.ne.f32.partialorder %v378_v1, 0.0  ;;  %vm389_vm11 = vcmp.ne.f32.partialorder %v379_v3, 0.0 }
 0x13f   :  { %v390_v6 = vsel %vm388_vm10, %v667_v0, -inf  ;;  %625 = vst.msk [vmem:[%s1071_s1 + $0x38] sm:$0x3] %vm18_vm1, %v383_v4  ;;  %v391_v7 = vsel %vm389_vm11, %v387_v5, -inf }
 0x140   :  { %v392_v8 = vsel %vm16_vm0, %v390_v6, -inf  ;;  %v393_v10 = vsel %vm18_vm1, %v391_v7, -inf }
 0x141   :  { %v394_v11 = vmax.f32 %v392_v8, %v393_v10  ;;  %v637_v8 = vld [vmem:[%s1070_s0 + $0x28] sm:$0x3] }
 0x143   :  { %v395_v13 = vrot.slane %v394_v11, 4 }
 0x145   :  { %v396_v14 = vmax.f32 %v394_v11, %v395_v13 }
 0x147   :  { %v397_v15 = vrot.slane %v396_v14, 2 }
 0x149   :  { %v398_v16 = vmax.f32 %v396_v14, %v397_v15 }
 0x14b   :  { %v399_v17 = vrot.slane %v398_v16, 1 }
 0x14d   :  { %v400_v18 = vmax.f32 %v398_v16, %v399_v17 }
 0x14f   :  { %vm402_vm12 = vcmp.ge.f32.partialorder %v391_v7, %v400_v18  ;;  %vm401_vm13 = vcmp.ge.f32.partialorder %v390_v6, %v400_v18 }
 0x150   :  { %vm404_vm14 = vmand %vm389_vm11, %vm402_vm12 }
 0x151   :  { %v406_v0 = vsel %vm404_vm14, %v678_v12, 10  ;;  %vm403_vm15 = vmand %vm388_vm10, %vm401_vm13 }
 0x152   :  { %v408_v19 = vsel %vm18_vm1, %v406_v0, 2147483647  ;;  %v405_v20 = vsel %vm403_vm15, %v675_v9, 10 }
 0x153   :  { %v407_v21 = vsel %vm16_vm0, %v405_v20, 2147483647 }
 0x154   :  { %vm409_vm2 = vcmp.lt.s32.totalorder %v407_v21, %v408_v19 }
 0x155   :  { %v410_v22 = vsel %vm409_vm2, %v407_v21, %v408_v19 }
 0x156   :  { %v411_v23 = vrot.slane %v410_v22, 4 }
 0x158   :  { %vm412_vm3 = vcmp.lt.s32.totalorder %v410_v22, %v411_v23 }
 0x159   :  { %v413_v24 = vsel %vm412_vm3, %v410_v22, %v411_v23 }
 0x15a   :  { %v414_v26 = vrot.slane %v413_v24, 2 }
 0x15c   :  { %vm415_vm4 = vcmp.lt.s32.totalorder %v413_v24, %v414_v26 }
 0x15d   :  { %v416_v28 = vsel %vm415_vm4, %v413_v24, %v414_v26 }
 0x15e   :  { %v417_v30 = vrot.slane %v416_v28, 1 }
 0x160   :  { %vm418_vm5 = vcmp.lt.s32.totalorder %v416_v28, %v417_v30 }
 0x161   :  { %v419_v31 = vsel %vm418_vm5, %v416_v28, %v417_v30 }
 0x162   :  { %vm420_vm6 = vcmp.eq.s32.totalorder %v675_v9, %v419_v31  ;;  %vm421_vm7 = vcmp.eq.s32.totalorder %v678_v12, %v419_v31 }
 0x163   :  { %v626_v34 = vsel %vm420_vm6, 1.0, %v653_v25  ;;  %v627_v35 = vsel %vm421_vm7, 1.0, %v653_v25 }
 0x164   :  { %v426_v36 = vsub.f32 %v378_v1, %v626_v34  ;;  %v430_v37 = vadd.f32 %v626_v34, %v428_v32  ;;  %v427_v38 = vsub.f32 %v379_v3, %v627_v35  ;;  %v431_v39 = vadd.f32 %v627_v35, %v429_v33  ;;  %v633_v1 = vld [vmem:[%s1071_s1 + $0x18] sm:$0x3]  ;;  %v640_v34 = vld [vmem:[%s1071_s1 + $0x20] sm:$0xff]  ;;  %v641_v35 = vld [vmem:[%s1071_s1 + $0x28] sm:$0x3] }
 0x166   :  { %432 = vst.msk [vmem:[%s1071_s1] sm:$0xff] %vm16_vm0, %v430_v37  ;;  %vm436_vm8 = vcmp.ne.f32.partialorder %v426_v36, 0.0  ;;  %vm437_vm9 = vcmp.ne.f32.partialorder %v427_v38, 0.0 }
 0x167   :  { %v438_v41 = vsel %vm436_vm8, %v696_v29, -inf  ;;  %433 = vst.msk [vmem:[%s1071_s1 + $0x8] sm:$0x3] %vm18_vm1, %v431_v39  ;;  %v439_v42 = vsel %vm437_vm9, %v629_v40, -inf }
 0x168   :  { %v440_v43 = vsel %vm16_vm0, %v438_v41, -inf  ;;  %v441_v44 = vsel %vm18_vm1, %v439_v42, -inf }
 0x169   :  { %v442_v45 = vmax.f32 %v440_v43, %v441_v44 }
 0x16b   :  { %v443_v46 = vrot.slane %v442_v45, 4 }
 0x16d   :  { %v444_v47 = vmax.f32 %v442_v45, %v443_v46 }
 0x16f   :  { %v445_v48 = vrot.slane %v444_v47, 2 }
 0x171   :  { %v446_v49 = vmax.f32 %v444_v47, %v445_v48 }
 0x173   :  { %v447_v50 = vrot.slane %v446_v49, 1 }
 0x175   :  { %v448_v51 = vmax.f32 %v446_v49, %v447_v50 }
 0x177   :  { %vm450_vm10 = vcmp.ge.f32.partialorder %v439_v42, %v448_v51  ;;  %vm449_vm11 = vcmp.ge.f32.partialorder %v438_v41, %v448_v51  ;;  %v645_v41 = vld [vmem:[%s1070_s0 + $0x38] sm:$0x3] }
 0x178   :  { %vm452_vm12 = vmand %vm437_vm9, %vm450_vm10 }
 0x179   :  { %v454_v29 = vsel %vm452_vm12, %v678_v12, 10  ;;  %vm451_vm13 = vmand %vm436_vm8, %vm449_vm11 }
 0x17a   :  { %v456_v52 = vsel %vm18_vm1, %v454_v29, 2147483647  ;;  %v453_v53 = vsel %vm451_vm13, %v675_v9, 10 }
 0x17b   :  { %v455_v54 = vsel %vm16_vm0, %v453_v53, 2147483647 }
 0x17c   :  { %vm457_vm14 = vcmp.lt.s32.totalorder %v455_v54, %v456_v52 }
 0x17d   :  { %v458_v55 = vsel %vm457_vm14, %v455_v54, %v456_v52 }
 0x17e   :  { %v459_v56 = vrot.slane %v458_v55, 4 }
 0x180   :  { %vm460_vm15 = vcmp.lt.s32.totalorder %v458_v55, %v459_v56 }
 0x181   :  { %v461_v57 = vsel %vm460_vm15, %v458_v55, %v459_v56 }
 0x182   :  { %v462_v58 = vrot.slane %v461_v57, 2 }
 0x184   :  { %vm463_vm2 = vcmp.lt.s32.totalorder %v461_v57, %v462_v58 }
 0x185   :  { %v464_v60 = vsel %vm463_vm2, %v461_v57, %v462_v58 }
 0x186   :  { %v465_v61 = vrot.slane %v464_v60, 1 }
 0x188   :  { %vm466_vm3 = vcmp.lt.s32.totalorder %v464_v60, %v465_v61 }
 0x189   :  { %v467_v62 = vsel %vm466_vm3, %v464_v60, %v465_v61 }
 0x18a   :  { %vm468_vm4 = vcmp.eq.s32.totalorder %v675_v9, %v467_v62  ;;  %vm469_vm5 = vcmp.eq.s32.totalorder %v678_v12, %v467_v62 }
 0x18b   :  { %v630_v2 = vsel %vm468_vm4, 1.0, %v653_v25  ;;  %v631_v3 = vsel %vm469_vm5, 1.0, %v653_v25 }
 0x18c   :  { %v474_v4 = vsub.f32 %v426_v36, %v630_v2  ;;  %v478_v5 = vadd.f32 %v632_v63, %v630_v2  ;;  %v475_v6 = vsub.f32 %v427_v38, %v631_v3  ;;  %v479_v7 = vadd.f32 %v633_v1, %v631_v3  ;;  %v648_v3 = vld [vmem:[%s1071_s1 + $0x30] sm:$0xff] }
 0x18e   :  { %634 = vst.msk [vmem:[%s1071_s1 + $0x10] sm:$0xff] %vm16_vm0, %v478_v5  ;;  %vm484_vm6 = vcmp.ne.f32.partialorder %v474_v4, 0.0  ;;  %vm485_vm7 = vcmp.ne.f32.partialorder %v475_v6, 0.0 }
 0x18f   :  { %v486_v10 = vsel %vm484_vm6, %v739_v59, -inf  ;;  %635 = vst.msk [vmem:[%s1071_s1 + $0x18] sm:$0x3] %vm18_vm1, %v479_v7  ;;  %v487_v11 = vsel %vm485_vm7, %v637_v8, -inf }
 0x190   :  { %v488_v13 = vsel %vm16_vm0, %v486_v10, -inf  ;;  %v489_v14 = vsel %vm18_vm1, %v487_v11, -inf }
 0x191   :  { %v490_v15 = vmax.f32 %v488_v13, %v489_v14 }
 0x193   :  { %v491_v16 = vrot.slane %v490_v15, 4 }
 0x195   :  { %v492_v17 = vmax.f32 %v490_v15, %v491_v16 }
 0x197   :  { %v493_v18 = vrot.slane %v492_v17, 2 }
 0x199   :  { %v494_v0 = vmax.f32 %v492_v17, %v493_v18 }
 0x19b   :  { %v495_v19 = vrot.slane %v494_v0, 1 }
 0x19d   :  { %v496_v20 = vmax.f32 %v494_v0, %v495_v19 }
 0x19f   :  { %vm498_vm8 = vcmp.ge.f32.partialorder %v487_v11, %v496_v20  ;;  %vm497_vm9 = vcmp.ge.f32.partialorder %v486_v10, %v496_v20 }
 0x1a0   :  { %vm500_vm10 = vmand %vm485_vm7, %vm498_vm8 }
 0x1a1   :  { %v502_v59 = vsel %vm500_vm10, %v678_v12, 10  ;;  %vm499_vm11 = vmand %vm484_vm6, %vm497_vm9 }
 0x1a2   :  { %v504_v21 = vsel %vm18_vm1, %v502_v59, 2147483647  ;;  %v501_v22 = vsel %vm499_vm11, %v675_v9, 10 }
 0x1a3   :  { %v503_v23 = vsel %vm16_vm0, %v501_v22, 2147483647 }
 0x1a4   :  { %vm505_vm12 = vcmp.lt.s32.totalorder %v503_v23, %v504_v21 }
 0x1a5   :  { %v506_v24 = vsel %vm505_vm12, %v503_v23, %v504_v21 }
 0x1a6   :  { %v507_v26 = vrot.slane %v506_v24, 4 }
 0x1a8   :  { %vm508_vm13 = vcmp.lt.s32.totalorder %v506_v24, %v507_v26 }
 0x1a9   :  { %v509_v28 = vsel %vm508_vm13, %v506_v24, %v507_v26 }
 0x1aa   :  { %v510_v30 = vrot.slane %v509_v28, 2 }
 0x1ac   :  { %vm511_vm14 = vcmp.lt.s32.totalorder %v509_v28, %v510_v30 }
 0x1ad   :  { %v512_v31 = vsel %vm511_vm14, %v509_v28, %v510_v30 }
 0x1ae   :  { %v513_v32 = vrot.slane %v512_v31, 1 }
 0x1b0   :  { %vm514_vm15 = vcmp.lt.s32.totalorder %v512_v31, %v513_v32 }
 0x1b1   :  { %v515_v33 = vsel %vm514_vm15, %v512_v31, %v513_v32 }
 0x1b2   :  { %vm516_vm2 = vcmp.eq.s32.totalorder %v675_v9, %v515_v33  ;;  %vm517_vm3 = vcmp.eq.s32.totalorder %v678_v12, %v515_v33 }
 0x1b3   :  { %v638_v36 = vsel %vm516_vm2, 1.0, %v653_v25  ;;  %v639_v37 = vsel %vm517_vm3, 1.0, %v653_v25 }
 0x1b4   :  { %v522_v38 = vsub.f32 %v474_v4, %v638_v36  ;;  %v523_v39 = vsub.f32 %v475_v6, %v639_v37  ;;  %v526_v40 = vadd.f32 %v640_v34, %v638_v36  ;;  %v527_v42 = vadd.f32 %v641_v35, %v639_v37  ;;  %v649_v4 = vld [vmem:[%s1071_s1 + $0x38] sm:$0x3] }
 0x1b6   :  { %642 = vst.msk [vmem:[%s1071_s1 + $0x20] sm:$0xff] %vm16_vm0, %v526_v40  ;;  %vm1025_vm4 = vcmp.ne.f32.partialorder %v522_v38, 0.0  ;;  %vm1029_vm5 = vcmp.ne.f32.partialorder %v523_v39, 0.0 }
 0x1b7   :  { %v534_v45 = vsel %vm1025_vm4, %v770_v27, -inf  ;;  %v535_v46 = vsel %vm1029_vm5, %v645_v41, -inf  ;;  %643 = vst.msk [vmem:[%s1071_s1 + $0x28] sm:$0x3] %vm18_vm1, %v527_v42 }
 0x1b8   :  { %v536_v47 = vsel %vm16_vm0, %v534_v45, -inf  ;;  %v537_v48 = vsel %vm18_vm1, %v535_v46, -inf }
 0x1b9   :  { %v538_v49 = vmax.f32 %v536_v47, %v537_v48 }
 0x1bb   :  { %v539_v50 = vrot.slane %v538_v49, 4 }
 0x1bd   :  { %v540_v51 = vmax.f32 %v538_v49, %v539_v50 }
 0x1bf   :  { %v541_v29 = vrot.slane %v540_v51, 2 }
 0x1c1   :  { %v542_v52 = vmax.f32 %v540_v51, %v541_v29 }
 0x1c3   :  { %v543_v53 = vrot.slane %v542_v52, 1 }
 0x1c5   :  { %v544_v54 = vmax.f32 %v542_v52, %v543_v53 }
 0x1c7   :  { %vm545_vm6 = vcmp.ge.f32.partialorder %v534_v45, %v544_v54  ;;  %vm546_vm7 = vcmp.ge.f32.partialorder %v535_v46, %v544_v54 }
 0x1c8   :  { %vm547_vm8 = vmand %vm1025_vm4, %vm545_vm6 }
 0x1c9   :  { %vm548_vm9 = vmand %vm1029_vm5, %vm546_vm7  ;;  %v549_v27 = vsel %vm547_vm8, %v675_v9, 10 }
 0x1ca   :  { %v550_v55 = vsel %vm548_vm9, %v678_v12, 10  ;;  %v551_v56 = vsel %vm16_vm0, %v549_v27, 2147483647 }
 0x1cb   :  { %v552_v57 = vsel %vm18_vm1, %v550_v55, 2147483647 }
 0x1cc   :  { %vm553_vm10 = vcmp.lt.s32.totalorder %v551_v56, %v552_v57 }
 0x1cd   :  { %v554_v58 = vsel %vm553_vm10, %v551_v56, %v552_v57 }
 0x1ce   :  { %v555_v60 = vrot.slane %v554_v58, 4 }
 0x1d0   :  { %vm556_vm11 = vcmp.lt.s32.totalorder %v554_v58, %v555_v60 }
 0x1d1   :  { %v557_v61 = vsel %vm556_vm11, %v554_v58, %v555_v60 }
 0x1d2   :  { %v558_v62 = vrot.slane %v557_v61, 2 }
 0x1d4   :  { %vm559_vm12 = vcmp.lt.s32.totalorder %v557_v61, %v558_v62 }
 0x1d5   :  { %v560_v63 = vsel %vm559_vm12, %v557_v61, %v558_v62 }
 0x1d6   :  { %v561_v1 = vrot.slane %v560_v63, 1 }
 0x1d8   :  { %vm562_vm13 = vcmp.lt.s32.totalorder %v560_v63, %v561_v1 }
 0x1d9   :  { %v563_v2 = vsel %vm562_vm13, %v560_v63, %v561_v1 }
 0x1da   :  { %vm564_vm14 = vcmp.eq.s32.totalorder %v675_v9, %v563_v2  ;;  %vm565_vm15 = vcmp.eq.s32.totalorder %v678_v12, %v563_v2 }
 0x1db   :  { %v646_v5 = vsel %vm564_vm14, 1.0, %v653_v25  ;;  %v647_v6 = vsel %vm565_vm15, 1.0, %v653_v25 }
 0x1dc   :  { %v572_v7 = vadd.f32 %v648_v3, %v646_v5  ;;  %v573_v8 = vadd.f32 %v649_v4, %v647_v6 }
 0x1de   :  { %650 = vst.msk [vmem:[%s1071_s1 + $0x30] sm:$0xff] %vm16_vm0, %v572_v7 }
 0x1df   :  { %651 = vst.msk [vmem:[%s1071_s1 + $0x38] sm:$0x3] %vm18_vm1, %v573_v8 }

</bundles_post_ra>
